<compile_context>
chip_gen: v7x
topology: tpu7x:2x2x1
jax: 0.10.0
libtpu: 0.0.40
codegen_flags: <defaults>
</compile_context>

<pallas_src>
import math
import random
from functools import partial, lru_cache

import numpy as np
import jax
import jax.numpy as jnp
from jax.experimental import pallas as pl
from jax.experimental.pallas import tpu as pltpu


# ---------------------------------------------------------------------------
# Pallas kernels (refs are 2D (r_tile, c_tile) tiles; leading batch dim squeezed)
# ---------------------------------------------------------------------------
def _mix_sum_kernel(lam_ref, a_ref, b_ref, o_ref, *, compute_dtype):
    # lam_ref: SMEM (1,) f32 scalar-prefetch.  Math stays in the input dtype for
    # floating inputs (bf16/f16 native on v6e/v7x VPUs), f32 otherwise.
    lam32 = lam_ref[0]
    lam_c = lam32.astype(compute_dtype)
    one_minus_lam_c = (1.0 - lam32).astype(compute_dtype)
    a = a_ref[...].astype(compute_dtype)
    b = b_ref[...].astype(compute_dtype)
    o_ref[...] = (lam_c * a + one_minus_lam_c * b).astype(o_ref.dtype)


def _mix_max_kernel(a_ref, b_ref, o_ref):
    o_ref[...] = jnp.maximum(a_ref[...], b_ref[...])


# ---------------------------------------------------------------------------
# Generation-aware budgets & tiling helpers
# ---------------------------------------------------------------------------
_MIN_PALLAS_BYTES = 256 * 1024    # per output half; below this, fused XLA wins
_MIN_EXAMPLE_BYTES = 64 * 1024    # per-example feature bytes needed for the (B,R,C) path
_MAX_LANE_TILE = 2048             # lane tile cap (multiple of 128)


@lru_cache(maxsize=None)
def _vmem_budget():
    """Return (per-output-tile byte cap, vmem_limit_bytes) for this TPU generation.

    Live VMEM per grid step ~= (a + b + out) tiles x 2 pipeline buffers = 6 tiles.
    """
    kind = ""
    try:
        kind = jax.devices()[0].device_kind.lower()
    except Exception:  # pragma: no cover - defensive; fall back to conservative budget
        pass
    older = any(tag in kind for tag in ("v2", "v3", "v4", "v5"))
    if older:
        # v5e & older: 2 MiB out tiles -> ~12 MiB live; 24 MiB scoped limit (headroom).
        return 2 * 1024 * 1024, 24 * 1024 * 1024
    # v6e / v7x: 4 MiB out tiles -> ~24 MiB live; explicit 32 MiB scoped limit
    # (v7x physical VMEM is 64 MiB, v6e 128 MiB -> plenty of headroom).
    return 4 * 1024 * 1024, 32 * 1024 * 1024


def _largest_lane_cols(n):
    """Largest divisor of n that is a multiple of 128 and <= _MAX_LANE_TILE, or None."""
    if n <= 0 or n % 128 != 0:
        return None
    m = n // 128
    d = min(_MAX_LANE_TILE // 128, m)
    while d > 1 and m % d != 0:
        d -= 1
    return 128 * d


def _flat_view(total):
    """Lane-dense (rows, cols) view of one fully flattened half (even batch)."""
    cols = _largest_lane_cols(total)
    if cols is None:
        return None
    return total // cols, cols


def _example_view(feat, itemsize):
    """Lane-dense (R, C) view of one example's features (odd batch / unfactorable)."""
    cols = _largest_lane_cols(feat)
    if cols is not None:
        return feat // cols, cols
    tile_budget, _ = _vmem_budget()
    if feat >= 128 and feat * itemsize <= tile_budget:
        return 1, feat   # full-dim lane block is legal even if not 128-aligned
    return None          # lane-skinny / too large & unfactorable -> fused XLA


def _choose_tiles(rows, cols, itemsize, ensure_multi):
    """(8,128)-legal tiles capped at the generation tile budget; >=2 grid steps if asked."""
    tile_budget, _ = _vmem_budget()
    max_elems = max(8 * 128, tile_budget // max(1, itemsize))
    if cols <= 128:
        c_tile = cols                                          # == full dim -> legal
    else:
        c_tile = max(128, min(_MAX_LANE_TILE, (cols // 128) * 128))   # multiple of 128
    rows_budget = max(8, max_elems // max(1, c_tile))
    if rows <= rows_budget:
        r_tile = rows                                          # == full dim -> legal
    else:
        r_tile = max(8, (rows_budget // 8) * 8)
    if ensure_multi and pl.cdiv(rows, r_tile) * pl.cdiv(cols, c_tile) < 2:
        # Guarantee >= 2 parallel grid steps so v7x's two TensorCores both get work.
        if rows > 8:
            r_tile = max(8, (pl.cdiv(rows, 2) // 8) * 8)
        elif cols >= 256:
            c_tile = max(128, ((cols // 2) // 128) * 128)
    return r_tile, c_tile


# ---------------------------------------------------------------------------
# pallas_call wrapper (shared by even-batch flat view and odd-batch clamped view)
# ---------------------------------------------------------------------------
def _pallas_mix(x_view, half_v, lam, mix_type, out_dtype, compute_dtype):
    """Mix rows i and min(i + half_v, Bv - 1) of x_view (Bv, rows, cols), i < half_v."""
    bv, rows, cols = x_view.shape
    in_item = jnp.dtype(x_view.dtype).itemsize
    out_item = jnp.dtype(out_dtype).itemsize
    r_tile, c_tile = _choose_tiles(rows, cols, max(in_item, out_item),
                                   ensure_multi=(half_v < 2))
    grid = (half_v, pl.cdiv(rows, r_tile), pl.cdiv(cols, c_tile))
    blk = (None, r_tile, c_tile)   # leading dim squeezed -> kernel refs are 2D tiles

    def a_map(i, r, c, *_):
        return (i, r, c)

    def b_map(i, r, c, *_):
        # Clamp reproduces the "duplicate last row" odd-batch padding copy-free.
        return (jnp.minimum(i + half_v, bv - 1), r, c)

    def o_map(i, r, c, *_):
        return (i, r, c)

    n_out = half_v * rows * cols
    cost = pl.CostEstimate(
        flops=(3 if mix_type == "sum" else 1) * n_out,
        transcendentals=0,
        bytes_accessed=n_out * (2 * in_item + out_item))

    _, vmem_limit = _vmem_budget()
    cparams = pltpu.CompilerParams(
        dimension_semantics=("parallel", "parallel", "parallel"),
        vmem_limit_bytes=vmem_limit)

    out_shape = jax.ShapeDtypeStruct((half_v, rows, cols), out_dtype)

    if mix_type == "sum":
        lam_arr = jnp.reshape(lam.astype(jnp.float32), (1,))
        return pl.pallas_call(
            partial(_mix_sum_kernel, compute_dtype=compute_dtype),
            out_shape=out_shape,
            grid_spec=pltpu.PrefetchScalarGridSpec(
                num_scalar_prefetch=1,
                grid=grid,
                in_specs=[pl.BlockSpec(blk, a_map), pl.BlockSpec(blk, b_map)],
                out_specs=pl.BlockSpec(blk, o_map)),
            compiler_params=cparams,
            cost_estimate=cost,
        )(lam_arr, x_view, x_view)

    # mix_type == "max"
    return pl.pallas_call(
        _mix_max_kernel,
        out_shape=out_shape,
        grid=grid,
        in_specs=[pl.BlockSpec(blk, a_map), pl.BlockSpec(blk, b_map)],
        out_specs=pl.BlockSpec(blk, o_map),
        compiler_params=cparams,
        cost_estimate=cost,
    )(x_view, x_view)


# ---------------------------------------------------------------------------
# Per-tensor mix (traced inside the single jitted multi-tensor mix below)
# ---------------------------------------------------------------------------
def _mix_one(x, lam, mix_type):
    if mix_type not in ("sum", "max"):
        raise NotImplementedError("Unknown mix_type: {}".format(mix_type))

    bsz = x.shape[0]
    trailing = tuple(x.shape[1:])
    feat = math.prod(trailing) if trailing else 1
    half = (bsz + 1) // 2
    out_shape = (half,) + trailing

    if mix_type == "sum":
        if jnp.issubdtype(x.dtype, jnp.floating):
            # Native-dtype math: bf16/f16 stays bf16/f16 (matches torch
            # float_scalar * tensor keeping the tensor dtype; no f32 upcast).
            compute_dtype = x.dtype
            out_dtype = x.dtype
        else:
            # TODO(synk): torch promotes float_scalar * int_tensor via its default
            # float dtype; we pin the promoted dtype explicitly to float32.
            compute_dtype = jnp.float32
            out_dtype = jnp.float32
    else:
        compute_dtype = x.dtype
        out_dtype = x.dtype

    in_item = jnp.dtype(x.dtype).itemsize
    out_item = jnp.dtype(out_dtype).itemsize
    item = max(in_item, out_item)

    x_view = None
    half_v = 1
    if half * feat * out_item >= _MIN_PALLAS_BYTES:
        if bsz % 2 == 0:
            # Copy-free (2, rows, cols) lane-dense view of the two halves.
            rc = _flat_view(half * feat)
            if rc is not None:
                x_view = x.reshape((2,) + rc)
                half_v = 1
        if x_view is None and feat * item >= _MIN_EXAMPLE_BYTES:
            # Copy-free per-example view; odd batches duplicate the last row via
            # a clamped row index in the b-half BlockSpec (no concatenate copy).
            rc = _example_view(feat, item)
            if rc is not None:
                x_view = x.reshape((bsz,) + rc)
                half_v = half

    if x_view is not None:
        out_view = _pallas_mix(x_view, half_v, lam, mix_type, out_dtype, compute_dtype)
        return out_view.reshape(out_shape)

    # Fused-XLA fallback: tiny tensors (pallas_call launch overhead dominates) and
    # lane-skinny / unfactorable layouts (masked partial stores & tiny DMAs would
    # cost more than XLA's fused elementwise, which is already HBM-bound).
    # TODO(synk): odd batches on this (small-tensor) path still pay the tiny
    # concatenate copy; the large-tensor path above avoids it entirely.
    a = x[:half]
    b = x[half:]
    if bsz % 2 != 0:
        b = jnp.concatenate([b, x[-1:]], axis=0)
    if mix_type == "sum":
        lam32 = lam.astype(jnp.float32)
        lam_c = lam32.astype(compute_dtype)
        oml_c = (1.0 - lam32).astype(compute_dtype)
        out = (lam_c * a.astype(compute_dtype)
               + oml_c * b.astype(compute_dtype)).astype(out_dtype)
    else:
        out = jnp.maximum(a, b)
    return out.reshape(out_shape)


@partial(jax.jit, static_argnames=("mix_types",))
def _mix_all(lam, *xs, mix_types):
    # Single jit for the whole multi-tensor mix: all Pallas calls + XLA epilogues
    # compile into one program -> one dispatch per MixUp invocation.
    return [None if sub is None else _mix_one(sub, lam, mt)
            for sub, mt in zip(xs, mix_types)]


# ---------------------------------------------------------------------------
# MixUp module (JAX / Pallas)
# ---------------------------------------------------------------------------
class MixUpPallas:
    """JAX/Pallas port of the track2_AVDR MixUp module (forward only)."""

    def __init__(self, mix_probability, alpha, mix_types):
        self.mix_probability = mix_probability
        self.alpha = alpha
        self.mix_types = tuple(mix_types)
        self.training = True
        self.last_lam = None   # recorded for inspection / testing

    def __call__(self, *x):
        assert len(x) == len(self.mix_types), "{} but {}".format(
            len(x), len(self.mix_types))
        if self.training and random.uniform(0, 1) < self.mix_probability:
            lam = float(np.random.beta(self.alpha, self.alpha))
            self.last_lam = lam
            lam_j = jnp.asarray(lam, dtype=jnp.float32)
            return _mix_all(lam_j, *x, mix_types=self.mix_types)
        self.last_lam = None
        return [*x]


# ---------------------------------------------------------------------------
# Demo / self-test
# ---------------------------------------------------------------------------
if __name__ == "__main__":
    random.seed(0)
    np.random.seed(0)

    mixer = MixUpPallas(mix_probability=1.0, alpha=0.2,
                        mix_types=("sum", "max", "sum", "sum", "sum"))

    key = jax.random.PRNGKey(0)
    k1, k2, k3, k4 = jax.random.split(key, 4)
    # Even batch f32 -> copy-free flattened (2, rows, cols) Pallas 'sum' path.
    x_sum = jax.random.normal(k1, (8, 4, 128, 128), dtype=jnp.float32)
    # Odd batch -> copy-free clamped-row-index Pallas 'max' path (no concatenate).
    x_max = jax.random.normal(k2, (5, 64, 512), dtype=jnp.float32)
    # bf16 even batch -> native-bf16 compute Pallas 'sum' path.
    x_bf16 = jax.random.normal(k3, (8, 2, 128, 256), dtype=jnp.bfloat16)
    # Tiny tensor -> routed to the fused-XLA path (Pallas overhead not worth it).
    x_small = jax.random.normal(k4, (4, 32), dtype=jnp.float32)

    y = mixer(x_sum, x_max, x_bf16, x_small, None)
    y = jax.block_until_ready(y)
    y_sum, y_max, y_bf16, y_small, y_none = y
    lam = mixer.last_lam

    # Pure-JAX references (same semantics as the PyTorch module).
    a, b = x_sum[:4], x_sum[4:]
    ref_sum = lam * a + (1.0 - lam) * b
    xp = jnp.concatenate([x_max, x_max[-1:]], axis=0)
    ref_max = jnp.maximum(xp[:3], xp[3:])
    a16 = x_bf16[:4].astype(jnp.float32)
    b16 = x_bf16[4:].astype(jnp.float32)
    ref_bf16 = lam * a16 + (1.0 - lam) * b16
    a_s, b_s = x_small[:2], x_small[2:]
    ref_small = lam * a_s + (1.0 - lam) * b_s

    assert y_none is None
    assert y_sum.shape == (4, 4, 128, 128) and y_sum.dtype == jnp.float32
    assert y_max.shape == (3, 64, 512) and y_max.dtype == jnp.float32
    assert y_bf16.shape == (4, 2, 128, 256) and y_bf16.dtype == jnp.bfloat16
    assert y_small.shape == (2, 32)

    np.testing.assert_allclose(np.asarray(y_sum), np.asarray(ref_sum),
                               rtol=1e-5, atol=1e-5)
    np.testing.assert_allclose(np.asarray(y_max), np.asarray(ref_max),
                               rtol=1e-6, atol=1e-6)
    np.testing.assert_allclose(np.asarray(y_bf16.astype(jnp.float32)),
                               np.asarray(ref_bf16), rtol=5e-2, atol=5e-2)
    np.testing.assert_allclose(np.asarray(y_small), np.asarray(ref_small),
                               rtol=1e-5, atol=1e-5)

    print("KERNEL_OK")
</pallas_src>

<mosaic_0001>
module attributes {stable_mosaic.version = 11 : i64} {
  func.func @_mix_sum_kernel(%arg0: i32, %arg1: i32, %arg2: i32, %arg3: memref<1xf32, #tpu.memory_space<smem>>, %arg4: memref<1x64x2048xf32, #tpu.memory_space<vmem>>, %arg5: memref<1x64x2048xf32, #tpu.memory_space<vmem>>, %arg6: memref<1x64x2048xf32, #tpu.memory_space<vmem>>) attributes {dimension_semantics = [#tpu.dimension_semantics<parallel>, #tpu.dimension_semantics<parallel>, #tpu.dimension_semantics<parallel>], iteration_bounds = array<i64: 1, 2, 1>, scalar_prefetch = 1 : i64, scratch_operands = 0 : i64, tpu.core_type = #tpu.core_type<tc>, window_params = [{transform_indices = @transform_0, window_bounds = array<i64: 1, 64, 2048>}, {transform_indices = @transform_1, window_bounds = array<i64: 1, 64, 2048>}, {transform_indices = @transform_2, window_bounds = array<i64: 1, 64, 2048>}]} {
    %c0 = arith.constant 0 : index
    %0 = memref.load %arg3[%c0] : memref<1xf32, #tpu.memory_space<smem>>
    %cst = arith.constant 1.000000e+00 : f32
    %1 = arith.subf %cst, %0 : f32
    %c0_0 = arith.constant 0 : index
    %c0_1 = arith.constant 0 : index
    %c0_2 = arith.constant 0 : index
    %2 = vector.load %arg4[%c0_0, %c0_1, %c0_2] : memref<1x64x2048xf32, #tpu.memory_space<vmem>>, vector<1x64x2048xf32>
    %3 = vector.shape_cast %2 : vector<1x64x2048xf32> to vector<64x2048xf32>
    %c0_3 = arith.constant 0 : index
    %c0_4 = arith.constant 0 : index
    %c0_5 = arith.constant 0 : index
    %4 = vector.load %arg5[%c0_3, %c0_4, %c0_5] : memref<1x64x2048xf32, #tpu.memory_space<vmem>>, vector<1x64x2048xf32>
    %5 = vector.shape_cast %4 : vector<1x64x2048xf32> to vector<64x2048xf32>
    %6 = vector.broadcast %0 : f32 to vector<64x2048xf32>
    %7 = arith.mulf %6, %3 : vector<64x2048xf32>
    %8 = vector.broadcast %1 : f32 to vector<64x2048xf32>
    %9 = arith.mulf %8, %5 : vector<64x2048xf32>
    %10 = arith.addf %7, %9 : vector<64x2048xf32>
    %c0_6 = arith.constant 0 : index
    %c0_7 = arith.constant 0 : index
    %c0_8 = arith.constant 0 : index
    %11 = vector.load %arg6[%c0_6, %c0_7, %c0_8] : memref<1x64x2048xf32, #tpu.memory_space<vmem>>, vector<1x64x2048xf32>
    %12 = vector.shape_cast %11 : vector<1x64x2048xf32> to vector<64x2048xf32>
    %13 = vector.shape_cast %10 : vector<64x2048xf32> to vector<1x64x2048xf32>
    tpu.vector_store %arg6[%c0_6, %c0_7, %c0_8], %13 {strides = array<i32>} : memref<1x64x2048xf32, #tpu.memory_space<vmem>>, vector<1x64x2048xf32>,
    return
  }
  func.func @transform_0(%arg0: i32, %arg1: i32, %arg2: i32, %arg3: memref<1xf32, #tpu.memory_space<smem>>) -> (i32, i32, i32) {
    %c0_i32 = arith.constant 0 : i32
    return %arg0, %arg1, %arg2 : i32, i32, i32
  }
  func.func @transform_1(%arg0: i32, %arg1: i32, %arg2: i32, %arg3: memref<1xf32, #tpu.memory_space<smem>>) -> (i32, i32, i32) {
    %c1_i32 = arith.constant 1 : i32
    %0 = arith.addi %arg0, %c1_i32 : i32
    %c1_i32_0 = arith.constant 1 : i32
    %1 = arith.minsi %0, %c1_i32_0 : i32
    %c0_i32 = arith.constant 0 : i32
    return %1, %arg1, %arg2 : i32, i32, i32
  }
  func.func @transform_2(%arg0: i32, %arg1: i32, %arg2: i32, %arg3: memref<1xf32, #tpu.memory_space<smem>>) -> (i32, i32, i32) {
    %c0_i32 = arith.constant 0 : i32
    return %arg0, %arg1, %arg2 : i32, i32, i32
  }
}

module attributes {stable_mosaic.version = 11 : i64} {
  func.func @_mix_max_kernel(%arg0: i32, %arg1: i32, %arg2: i32, %arg3: memref<1x16x2048xf32, #tpu.memory_space<vmem>>, %arg4: memref<1x16x2048xf32, #tpu.memory_space<vmem>>, %arg5: memref<1x16x2048xf32, #tpu.memory_space<vmem>>) attributes {dimension_semantics = [#tpu.dimension_semantics<parallel>, #tpu.dimension_semantics<parallel>, #tpu.dimension_semantics<parallel>], iteration_bounds = array<i64: 3, 1, 1>, scalar_prefetch = 0 : i64, scratch_operands = 0 : i64, tpu.core_type = #tpu.core_type<tc>, window_params = [{transform_indices = @transform_0, window_bounds = array<i64: 1, 16, 2048>}, {transform_indices = @transform_1, window_bounds = array<i64: 1, 16, 2048>}, {transform_indices = @transform_2, window_bounds = array<i64: 1, 16, 2048>}]} {
    %c0 = arith.constant 0 : index
    %c0_0 = arith.constant 0 : index
    %c0_1 = arith.constant 0 : index
    %0 = vector.load %arg3[%c0, %c0_0, %c0_1] : memref<1x16x2048xf32, #tpu.memory_space<vmem>>, vector<1x16x2048xf32>
    %1 = vector.shape_cast %0 : vector<1x16x2048xf32> to vector<16x2048xf32>
    %c0_2 = arith.constant 0 : index
    %c0_3 = arith.constant 0 : index
    %c0_4 = arith.constant 0 : index
    %2 = vector.load %arg4[%c0_2, %c0_3, %c0_4] : memref<1x16x2048xf32, #tpu.memory_space<vmem>>, vector<1x16x2048xf32>
    %3 = vector.shape_cast %2 : vector<1x16x2048xf32> to vector<16x2048xf32>
    %4 = arith.maximumf %1, %3 : vector<16x2048xf32>
    %c0_5 = arith.constant 0 : index
    %c0_6 = arith.constant 0 : index
    %c0_7 = arith.constant 0 : index
    %5 = vector.load %arg5[%c0_5, %c0_6, %c0_7] : memref<1x16x2048xf32, #tpu.memory_space<vmem>>, vector<1x16x2048xf32>
    %6 = vector.shape_cast %5 : vector<1x16x2048xf32> to vector<16x2048xf32>
    %7 = vector.shape_cast %4 : vector<16x2048xf32> to vector<1x16x2048xf32>
    tpu.vector_store %arg5[%c0_5, %c0_6, %c0_7], %7 {strides = array<i32>} : memref<1x16x2048xf32, #tpu.memory_space<vmem>>, vector<1x16x2048xf32>,
    return
  }
  func.func @transform_0(%arg0: i32, %arg1: i32, %arg2: i32) -> (i32, i32, i32) {
    %c0_i32 = arith.constant 0 : i32
    return %arg0, %arg1, %arg2 : i32, i32, i32
  }
  func.func @transform_1(%arg0: i32, %arg1: i32, %arg2: i32) -> (i32, i32, i32) {
    %c3_i32 = arith.constant 3 : i32
    %0 = arith.addi %arg0, %c3_i32 : i32
    %c4_i32 = arith.constant 4 : i32
    %1 = arith.minsi %0, %c4_i32 : i32
    %c0_i32 = arith.constant 0 : i32
    return %1, %arg1, %arg2 : i32, i32, i32
  }
  func.func @transform_2(%arg0: i32, %arg1: i32, %arg2: i32) -> (i32, i32, i32) {
    %c0_i32 = arith.constant 0 : i32
    return %arg0, %arg1, %arg2 : i32, i32, i32
  }
}

module attributes {stable_mosaic.version = 11 : i64} {
  func.func @_mix_sum_kernel(%arg0: i32, %arg1: i32, %arg2: i32, %arg3: memref<1xf32, #tpu.memory_space<smem>>, %arg4: memref<1x64x2048xbf16, #tpu.memory_space<vmem>>, %arg5: memref<1x64x2048xbf16, #tpu.memory_space<vmem>>, %arg6: memref<1x64x2048xbf16, #tpu.memory_space<vmem>>) attributes {dimension_semantics = [#tpu.dimension_semantics<parallel>, #tpu.dimension_semantics<parallel>, #tpu.dimension_semantics<parallel>], iteration_bounds = array<i64: 1, 2, 1>, scalar_prefetch = 1 : i64, scratch_operands = 0 : i64, tpu.core_type = #tpu.core_type<tc>, window_params = [{transform_indices = @transform_0, window_bounds = array<i64: 1, 64, 2048>}, {transform_indices = @transform_1, window_bounds = array<i64: 1, 64, 2048>}, {transform_indices = @transform_2, window_bounds = array<i64: 1, 64, 2048>}]} {
    %c0 = arith.constant 0 : index
    %0 = memref.load %arg3[%c0] : memref<1xf32, #tpu.memory_space<smem>>
    %1 = arith.truncf %0 : f32 to bf16
    %cst = arith.constant 1.000000e+00 : f32
    %2 = arith.subf %cst, %0 : f32
    %3 = arith.truncf %2 : f32 to bf16
    %c0_0 = arith.constant 0 : index
    %c0_1 = arith.constant 0 : index
    %c0_2 = arith.constant 0 : index
    %4 = vector.load %arg4[%c0_0, %c0_1, %c0_2] : memref<1x64x2048xbf16, #tpu.memory_space<vmem>>, vector<1x64x2048xbf16>
    %5 = vector.shape_cast %4 : vector<1x64x2048xbf16> to vector<64x2048xbf16>
    %c0_3 = arith.constant 0 : index
    %c0_4 = arith.constant 0 : index
    %c0_5 = arith.constant 0 : index
    %6 = vector.load %arg5[%c0_3, %c0_4, %c0_5] : memref<1x64x2048xbf16, #tpu.memory_space<vmem>>, vector<1x64x2048xbf16>
    %7 = vector.shape_cast %6 : vector<1x64x2048xbf16> to vector<64x2048xbf16>
    %8 = vector.broadcast %1 : bf16 to vector<64x2048xbf16>
    %9 = arith.mulf %8, %5 : vector<64x2048xbf16>
    %10 = vector.broadcast %3 : bf16 to vector<64x2048xbf16>
    %11 = arith.mulf %10, %7 : vector<64x2048xbf16>
    %12 = arith.addf %9, %11 : vector<64x2048xbf16>
    %c0_6 = arith.constant 0 : index
    %c0_7 = arith.constant 0 : index
    %c0_8 = arith.constant 0 : index
    %13 = vector.load %arg6[%c0_6, %c0_7, %c0_8] : memref<1x64x2048xbf16, #tpu.memory_space<vmem>>, vector<1x64x2048xbf16>
    %14 = vector.shape_cast %13 : vector<1x64x2048xbf16> to vector<64x2048xbf16>
    %15 = vector.shape_cast %12 : vector<64x2048xbf16> to vector<1x64x2048xbf16>
    tpu.vector_store %arg6[%c0_6, %c0_7, %c0_8], %15 {strides = array<i32>} : memref<1x64x2048xbf16, #tpu.memory_space<vmem>>, vector<1x64x2048xbf16>,
    return
  }
  func.func @transform_0(%arg0: i32, %arg1: i32, %arg2: i32, %arg3: memref<1xf32, #tpu.memory_space<smem>>) -> (i32, i32, i32) {
    %c0_i32 = arith.constant 0 : i32
    return %arg0, %arg1, %arg2 : i32, i32, i32
  }
  func.func @transform_1(%arg0: i32, %arg1: i32, %arg2: i32, %arg3: memref<1xf32, #tpu.memory_space<smem>>) -> (i32, i32, i32) {
    %c1_i32 = arith.constant 1 : i32
    %0 = arith.addi %arg0, %c1_i32 : i32
    %c1_i32_0 = arith.constant 1 : i32
    %1 = arith.minsi %0, %c1_i32_0 : i32
    %c0_i32 = arith.constant 0 : i32
    return %1, %arg1, %arg2 : i32, i32, i32
  }
  func.func @transform_2(%arg0: i32, %arg1: i32, %arg2: i32, %arg3: memref<1xf32, #tpu.memory_space<smem>>) -> (i32, i32, i32) {
    %c0_i32 = arith.constant 0 : i32
    return %arg0, %arg1, %arg2 : i32, i32, i32
  }
}

</mosaic_0001>

<bundles_post_ra>
// kernel: _mix_all.3
= control target key start
LH: loop header
LB: loop body
LE: loop exit
PB: predicated region body
PF: predicated region fallthrough
CT: control target
= control target key end

     0   :  { %s1303_s14 = smov 0   ;;  %s1305_s15 = smov 0   ;;  %s1994_s0 = inlined_call_operand.<no memory space> [shape: f32[1], index: 0, kind: input, shape index: {}]   ;;  %s1995_s1 = inlined_call_operand.vmem [shape: f32[2,128,2048], index: 1, kind: input, shape index: {}, may-alias: {1,2}]   ;;  %s1996_s2 = inlined_call_operand.vmem [shape: f32[2,128,2048], index: 2, kind: input, shape index: {}, may-alias: {1,2}]   ;;  %s1997_s3 = inlined_call_operand.vmem [shape: f32[1,128,2048], index: 3, kind: output, shape index: {}]  }
   0x1   :  { %8 = sst [smem:[#allocation3]] %s1994_s0  ;;  %s1307_s16 = smov 0  }
   0x2 LB: > { %s29_s0 = sadd.s32 1, %s1274_s15  ;;  %p1215_p0 = scmp.ge.s32.totalorder %s1278_s16, 1  ;;  %s1278_s16 = sphi %s1307_s16, %s14_s16   ;;  %s1274_s15 = sphi %s1305_s15, %s1999_s15   ;;  %s1270_s14 = sphi %s1303_s14, %s1998_s14  }
   0x3   : > { %p31_p1 = scmp.ge.s32.totalorder %s29_s0, 2  ;;  %p189_p2 = scmp.lt.s32.totalorder %s1278_s16, 3 }
   0x5   : > { %s2001_s0 = smov (%p31_p1, %s29_s0), 0  ;;  %p190_p3 = pnand %p1215_p0, %p189_p2 }
   0x6   : > { %s1216_s17 = sshll.u32 (!%p190_p3), %s1270_s14, 3  ;;  %s300_s18 = sld [smem:[#allocation3]] (!%p190_p3) }
   0x7   : > { %193 = sbr.rel (%p190_p3) target bundleno = 125 (0x7d), region = 28  ;;  %p250_p4 = scmp.lt.s32.totalorder (!%p190_p3), %s1216_s17, 15 }
   0xc   : > { %v1330_v0 = vstv (!%p190_p3), %s300_s18  ;;  %s301_s27 = ssub.f32 (!%p190_p3), 1.0, %s300_s18 }
   0xe   : > { %s2003_s17 = smov (!%p250_p4, %s1216_s17), 15  ;;  %v1349_v13 = vstv %s301_s27 }
   0xf   : > { %s1321_s19 = sshll.u32 %s2003_s17, 7 }
  0x10   : > { %s1327_s22 = scalar_lea.vmem %s1995_s1, %s1321_s19  ;;  %s1229_s23 = sadd.s32 2048, %s1321_s19 }
  0x11   : > { %s1335_s26 = scalar_lea.vmem %s1996_s2, %s1229_s23  ;;  %v302_v1 = vld [vmem:[%s1327_s22] sm:$0xff]  ;;  %v303_v2 = vld [vmem:[%s1327_s22 + $0x8] sm:$0xff]  ;;  %v304_v3 = vld [vmem:[%s1327_s22 + $0x10] sm:$0xff]  ;;  %s1367_s30 = scalar_lea.vmem %s1997_s3, %s1321_s19 }
  0x12   : > { %v430_v4 = vld [vmem:[%s1335_s26] sm:$0xff]  ;;  %v431_v5 = vld [vmem:[%s1335_s26 + $0x8] sm:$0xff]  ;;  %v432_v6 = vld [vmem:[%s1335_s26 + $0x10] sm:$0xff]  ;;  %v559_v7 = vmul.f32 %v1330_v0, %v302_v1  ;;  %v560_v8 = vmul.f32 %v1330_v0, %v303_v2  ;;  %v561_v9 = vmul.f32 %v1330_v0, %v304_v3 }
  0x13   : > { %v305_v10 = vld [vmem:[%s1327_s22 + $0x18] sm:$0xff]  ;;  %v306_v12 = vld [vmem:[%s1327_s22 + $0x20] sm:$0xff]  ;;  %v307_v17 = vld [vmem:[%s1327_s22 + $0x28] sm:$0xff]  ;;  %v688_v19 = vmul.f32 %v1349_v13, %v430_v4  ;;  %v689_v20 = vmul.f32 %v1349_v13, %v431_v5  ;;  %v690_v21 = vmul.f32 %v1349_v13, %v432_v6 }
  0x14   : > { %v433_v11 = vld [vmem:[%s1335_s26 + $0x18] sm:$0xff]  ;;  %v562_v14 = vmul.f32 %v1330_v0, %v305_v10  ;;  %v434_v15 = vld [vmem:[%s1335_s26 + $0x20] sm:$0xff]  ;;  %v563_v16 = vmul.f32 %v1330_v0, %v306_v12  ;;  %v435_v18 = vld [vmem:[%s1335_s26 + $0x28] sm:$0xff]  ;;  %v564_v27 = vmul.f32 %v1330_v0, %v307_v17 }
  0x15   : > { %v691_v22 = vmul.f32 %v1349_v13, %v433_v11  ;;  %v308_v23 = vld [vmem:[%s1327_s22 + $0x30] sm:$0xff]  ;;  %v309_v25 = vld [vmem:[%s1327_s22 + $0x38] sm:$0xff]  ;;  %v692_v26 = vmul.f32 %v1349_v13, %v434_v15  ;;  %v693_v28 = vmul.f32 %v1349_v13, %v435_v18  ;;  %v310_v31 = vld [vmem:[%s1327_s22 + $0x40] sm:$0xff]  ;;  %v816_v33 = vadd.f32 %v688_v19, %v559_v7 }
  0x16   : > { %v436_v24 = vld [vmem:[%s1335_s26 + $0x30] sm:$0xff]  ;;  %v565_v29 = vmul.f32 %v1330_v0, %v308_v23  ;;  %v437_v30 = vld [vmem:[%s1335_s26 + $0x38] sm:$0xff]  ;;  %v438_v32 = vld [vmem:[%s1335_s26 + $0x40] sm:$0xff]  ;;  %v817_v34 = vadd.f32 %v689_v20, %v560_v8  ;;  %v818_v35 = vadd.f32 %v690_v21, %v561_v9  ;;  %v566_v43 = vmul.f32 %v1330_v0, %v309_v25 }
  0x17   : > { %v819_v36 = vadd.f32 %v691_v22, %v562_v14  ;;  %v311_v37 = vld [vmem:[%s1327_s22 + $0x48] sm:$0xff]  ;;  %v312_v39 = vld [vmem:[%s1327_s22 + $0x50] sm:$0xff]  ;;  %v820_v40 = vadd.f32 %v692_v26, %v563_v16  ;;  %v821_v41 = vadd.f32 %v693_v28, %v564_v27  ;;  %v694_v42 = vmul.f32 %v1349_v13, %v436_v24  ;;  %v313_v45 = vld [vmem:[%s1327_s22 + $0x58] sm:$0xff]  ;;  %944 = vst [vmem:[%s1367_s30] sm:$0xff] %v816_v33 }
  0x18   : > { %v439_v38 = vld [vmem:[%s1335_s26 + $0x48] sm:$0xff]  ;;  %v440_v44 = vld [vmem:[%s1335_s26 + $0x50] sm:$0xff]  ;;  %v441_v46 = vld [vmem:[%s1335_s26 + $0x58] sm:$0xff]  ;;  %945 = vst [vmem:[%s1367_s30 + $0x8] sm:$0xff] %v817_v34  ;;  %v695_v47 = vmul.f32 %v1349_v13, %v437_v30  ;;  %v567_v48 = vmul.f32 %v1330_v0, %v310_v31  ;;  %v696_v49 = vmul.f32 %v1349_v13, %v438_v32  ;;  %v568_v50 = vmul.f32 %v1330_v0, %v311_v37 }
  0x19   : > { %946 = vst [vmem:[%s1367_s30 + $0x10] sm:$0xff] %v818_v35  ;;  %947 = vst [vmem:[%s1367_s30 + $0x18] sm:$0xff] %v819_v36  ;;  %v314_v51 = vld [vmem:[%s1327_s22 + $0x60] sm:$0xff]  ;;  %v822_v53 = vadd.f32 %v694_v42, %v565_v29  ;;  %v697_v54 = vmul.f32 %v1349_v13, %v439_v38  ;;  %v569_v55 = vmul.f32 %v1330_v0, %v312_v39  ;;  %v315_v57 = vld [vmem:[%s1327_s22 + $0x68] sm:$0xff] }
  0x1a   : > { %v442_v52 = vld [vmem:[%s1335_s26 + $0x60] sm:$0xff]  ;;  %948 = vst [vmem:[%s1367_s30 + $0x20] sm:$0xff] %v820_v40  ;;  %949 = vst [vmem:[%s1367_s30 + $0x28] sm:$0xff] %v821_v41  ;;  %v698_v56 = vmul.f32 %v1349_v13, %v440_v44  ;;  %v443_v58 = vld [vmem:[%s1335_s26 + $0x68] sm:$0xff]  ;;  %v823_v60 = vadd.f32 %v695_v47, %v566_v43  ;;  %v824_v61 = vadd.f32 %v696_v49, %v567_v48 }
  0x1b   : > { %v316_v59 = vld [vmem:[%s1327_s22 + $0x70] sm:$0xff]  ;;  %v570_v62 = vmul.f32 %v1330_v0, %v313_v45  ;;  %v699_v63 = vmul.f32 %v1349_v13, %v441_v46  ;;  %v317_v2 = vld [vmem:[%s1327_s22 + $0x78] sm:$0xff]  ;;  %950 = vst [vmem:[%s1367_s30 + $0x30] sm:$0xff] %v822_v53  ;;  %v825_v4 = vadd.f32 %v697_v54, %v568_v50  ;;  %v571_v6 = vmul.f32 %v1330_v0, %v314_v51  ;;  %v318_v8 = vld [vmem:[%s1327_s22 + $0x80] sm:$0xff] }
  0x1c   : > { %v444_v1 = vld [vmem:[%s1335_s26 + $0x70] sm:$0xff]  ;;  %v445_v3 = vld [vmem:[%s1335_s26 + $0x78] sm:$0xff]  ;;  %v826_v5 = vadd.f32 %v698_v56, %v569_v55  ;;  %v700_v7 = vmul.f32 %v1349_v13, %v442_v52  ;;  %v446_v9 = vld [vmem:[%s1335_s26 + $0x80] sm:$0xff]  ;;  %951 = vst [vmem:[%s1367_s30 + $0x38] sm:$0xff] %v823_v60  ;;  %v572_v12 = vmul.f32 %v1330_v0, %v315_v57  ;;  %v701_v14 = vmul.f32 %v1349_v13, %v443_v58 }
  0x1d   : > { %v319_v10 = vld [vmem:[%s1327_s22 + $0x88] sm:$0xff]  ;;  %952 = vst [vmem:[%s1367_s30 + $0x40] sm:$0xff] %v824_v61  ;;  %v827_v11 = vadd.f32 %v699_v63, %v570_v62  ;;  %v573_v15 = vmul.f32 %v1330_v0, %v316_v59  ;;  %v320_v17 = vld [vmem:[%s1327_s22 + $0x90] sm:$0xff]  ;;  %953 = vst [vmem:[%s1367_s30 + $0x48] sm:$0xff] %v825_v4  ;;  %v702_v19 = vmul.f32 %v1349_v13, %v444_v1 }
  0x1e   : > { %v447_v16 = vld [vmem:[%s1335_s26 + $0x88] sm:$0xff]  ;;  %954 = vst [vmem:[%s1367_s30 + $0x50] sm:$0xff] %v826_v5  ;;  %v828_v18 = vadd.f32 %v700_v7, %v571_v6  ;;  %v574_v20 = vmul.f32 %v1330_v0, %v317_v2  ;;  %v703_v21 = vmul.f32 %v1349_v13, %v445_v3  ;;  %v448_v22 = vld [vmem:[%s1335_s26 + $0x90] sm:$0xff]  ;;  %v321_v23 = vld [vmem:[%s1327_s22 + $0x98] sm:$0xff]  ;;  %v829_v25 = vadd.f32 %v701_v14, %v572_v12 }
  0x1f   : > { %v449_v24 = vld [vmem:[%s1335_s26 + $0x98] sm:$0xff]  ;;  %955 = vst [vmem:[%s1367_s30 + $0x58] sm:$0xff] %v827_v11  ;;  %v575_v26 = vmul.f32 %v1330_v0, %v318_v8  ;;  %v704_v27 = vmul.f32 %v1349_v13, %v446_v9  ;;  %v576_v28 = vmul.f32 %v1330_v0, %v319_v10  ;;  %v322_v29 = vld [vmem:[%s1327_s22 + $0xa0] sm:$0xff]  ;;  %v323_v31 = vld [vmem:[%s1327_s22 + $0xa8] sm:$0xff]  ;;  %v830_v32 = vadd.f32 %v702_v19, %v573_v15 }
  0x20   : > { %v450_v30 = vld [vmem:[%s1335_s26 + $0xa0] sm:$0xff]  ;;  %956 = vst [vmem:[%s1367_s30 + $0x60] sm:$0xff] %v828_v18  ;;  %v831_v33 = vadd.f32 %v703_v21, %v574_v20  ;;  %v705_v34 = vmul.f32 %v1349_v13, %v447_v16  ;;  %v577_v35 = vmul.f32 %v1330_v0, %v320_v17  ;;  %v451_v36 = vld [vmem:[%s1335_s26 + $0xa8] sm:$0xff]  ;;  %v324_v37 = vld [vmem:[%s1327_s22 + $0xb0] sm:$0xff]  ;;  %v706_v39 = vmul.f32 %v1349_v13, %v448_v22 }
  0x21   : > { %957 = vst [vmem:[%s1367_s30 + $0x68] sm:$0xff] %v829_v25  ;;  %v832_v38 = vadd.f32 %v704_v27, %v575_v26  ;;  %v578_v40 = vmul.f32 %v1330_v0, %v321_v23  ;;  %v707_v41 = vmul.f32 %v1349_v13, %v449_v24  ;;  %v452_v42 = vld [vmem:[%s1335_s26 + $0xb0] sm:$0xff]  ;;  %v325_v43 = vld [vmem:[%s1327_s22 + $0xb8] sm:$0xff]  ;;  %958 = vst [vmem:[%s1367_s30 + $0x70] sm:$0xff] %v830_v32 }
  0x22   : > { %v453_v44 = vld [vmem:[%s1335_s26 + $0xb8] sm:$0xff]  ;;  %959 = vst [vmem:[%s1367_s30 + $0x78] sm:$0xff] %v831_v33  ;;  %v833_v45 = vadd.f32 %v705_v34, %v576_v28  ;;  %v579_v46 = vmul.f32 %v1330_v0, %v322_v29  ;;  %v708_v47 = vmul.f32 %v1349_v13, %v450_v30  ;;  %v580_v48 = vmul.f32 %v1330_v0, %v323_v31  ;;  %v326_v49 = vld [vmem:[%s1327_s22 + $0xc0] sm:$0xff]  ;;  %v327_v51 = vld [vmem:[%s1327_s22 + $0xc8] sm:$0xff] }
  0x23   : > { %v454_v50 = vld [vmem:[%s1335_s26 + $0xc0] sm:$0xff]  ;;  %960 = vst [vmem:[%s1367_s30 + $0x80] sm:$0xff] %v832_v38  ;;  %v834_v52 = vadd.f32 %v706_v39, %v577_v35  ;;  %v835_v53 = vadd.f32 %v707_v41, %v578_v40  ;;  %v709_v54 = vmul.f32 %v1349_v13, %v451_v36  ;;  %v581_v55 = vmul.f32 %v1330_v0, %v324_v37  ;;  %v455_v56 = vld [vmem:[%s1335_s26 + $0xc8] sm:$0xff]  ;;  %v328_v57 = vld [vmem:[%s1327_s22 + $0xd0] sm:$0xff] }
  0x24   : > { %961 = vst [vmem:[%s1367_s30 + $0x88] sm:$0xff] %v833_v45  ;;  %v836_v58 = vadd.f32 %v708_v47, %v579_v46  ;;  %v710_v59 = vmul.f32 %v1349_v13, %v452_v42  ;;  %v582_v60 = vmul.f32 %v1330_v0, %v325_v43  ;;  %v711_v61 = vmul.f32 %v1349_v13, %v453_v44  ;;  %v456_v62 = vld [vmem:[%s1335_s26 + $0xd0] sm:$0xff]  ;;  %v329_v63 = vld [vmem:[%s1327_s22 + $0xd8] sm:$0xff]  ;;  %v330_v6 = vld [vmem:[%s1327_s22 + $0xe0] sm:$0xff] }
  0x25   : > { %v457_v1 = vld [vmem:[%s1335_s26 + $0xd8] sm:$0xff]  ;;  %962 = vst [vmem:[%s1367_s30 + $0x90] sm:$0xff] %v834_v52  ;;  %963 = vst [vmem:[%s1367_s30 + $0x98] sm:$0xff] %v835_v53  ;;  %v837_v2 = vadd.f32 %v709_v54, %v580_v48  ;;  %v583_v3 = vmul.f32 %v1330_v0, %v326_v49  ;;  %v712_v4 = vmul.f32 %v1349_v13, %v454_v50  ;;  %v458_v7 = vld [vmem:[%s1335_s26 + $0xe0] sm:$0xff] }
  0x26   : > { %v584_v5 = vmul.f32 %v1330_v0, %v327_v51  ;;  %v331_v8 = vld [vmem:[%s1327_s22 + $0xe8] sm:$0xff]  ;;  %964 = vst [vmem:[%s1367_s30 + $0xa0] sm:$0xff] %v836_v58  ;;  %v838_v9 = vadd.f32 %v710_v59, %v581_v55  ;;  %v839_v10 = vadd.f32 %v711_v61, %v582_v60  ;;  %v713_v11 = vmul.f32 %v1349_v13, %v455_v56  ;;  %v332_v15 = vld [vmem:[%s1327_s22 + $0xf0] sm:$0xff]  ;;  %v333_v21 = vld [vmem:[%s1327_s22 + $0xf8] sm:$0xff] }
  0x27   : > { %v585_v12 = vmul.f32 %v1330_v0, %v328_v57  ;;  %v459_v14 = vld [vmem:[%s1335_s26 + $0xe8] sm:$0xff]  ;;  %965 = vst [vmem:[%s1367_s30 + $0xa8] sm:$0xff] %v837_v2  ;;  %v840_v16 = vadd.f32 %v712_v4, %v583_v3  ;;  %v714_v17 = vmul.f32 %v1349_v13, %v456_v62  ;;  %v586_v18 = vmul.f32 %v1330_v0, %v329_v63  ;;  %v460_v20 = vld [vmem:[%s1335_s26 + $0xf0] sm:$0xff]  ;;  %v461_v22 = vld [vmem:[%s1335_s26 + $0xf8] sm:$0xff] }
  0x28   : > { %v715_v19 = vmul.f32 %v1349_v13, %v457_v1  ;;  %966 = vst [vmem:[%s1367_s30 + $0xb0] sm:$0xff] %v838_v9  ;;  %967 = vst [vmem:[%s1367_s30 + $0xb8] sm:$0xff] %v839_v10  ;;  %v841_v23 = vadd.f32 %v713_v11, %v584_v5  ;;  %v587_v24 = vmul.f32 %v1330_v0, %v330_v6  ;;  %v334_v27 = vld [vmem:[%s1327_s22 + $0x100] sm:$0xff]  ;;  %v335_v29 = vld [vmem:[%s1327_s22 + $0x108] sm:$0xff] }
  0x29   : > { %v716_v25 = vmul.f32 %v1349_v13, %v458_v7  ;;  %v588_v26 = vmul.f32 %v1330_v0, %v331_v8  ;;  %v462_v28 = vld [vmem:[%s1335_s26 + $0x100] sm:$0xff]  ;;  %968 = vst [vmem:[%s1367_s30 + $0xc0] sm:$0xff] %v840_v16  ;;  %v842_v30 = vadd.f32 %v714_v17, %v585_v12  ;;  %v717_v32 = vmul.f32 %v1349_v13, %v459_v14  ;;  %v463_v34 = vld [vmem:[%s1335_s26 + $0x108] sm:$0xff]  ;;  %v336_v35 = vld [vmem:[%s1327_s22 + $0x110] sm:$0xff] }
  0x2a   : > { %v843_v31 = vadd.f32 %v715_v19, %v586_v18  ;;  %v589_v33 = vmul.f32 %v1330_v0, %v332_v15  ;;  %969 = vst [vmem:[%s1367_s30 + $0xc8] sm:$0xff] %v841_v23  ;;  %v718_v37 = vmul.f32 %v1349_v13, %v460_v20  ;;  %v590_v38 = vmul.f32 %v1330_v0, %v333_v21  ;;  %v464_v40 = vld [vmem:[%s1335_s26 + $0x110] sm:$0xff]  ;;  %v337_v41 = vld [vmem:[%s1327_s22 + $0x118] sm:$0xff]  ;;  %v338_v47 = vld [vmem:[%s1327_s22 + $0x120] sm:$0xff] }
  0x2b   : > { %v844_v36 = vadd.f32 %v716_v25, %v587_v24  ;;  %v719_v39 = vmul.f32 %v1349_v13, %v461_v22  ;;  %v465_v42 = vld [vmem:[%s1335_s26 + $0x118] sm:$0xff]  ;;  %970 = vst [vmem:[%s1367_s30 + $0xd0] sm:$0xff] %v842_v30  ;;  %v845_v43 = vadd.f32 %v717_v32, %v588_v26  ;;  %v591_v44 = vmul.f32 %v1330_v0, %v334_v27  ;;  %v466_v48 = vld [vmem:[%s1335_s26 + $0x120] sm:$0xff]  ;;  %v339_v49 = vld [vmem:[%s1327_s22 + $0x128] sm:$0xff] }
  0x2c   : > { %971 = vst [vmem:[%s1367_s30 + $0xd8] sm:$0xff] %v843_v31  ;;  %v720_v45 = vmul.f32 %v1349_v13, %v462_v28  ;;  %v592_v46 = vmul.f32 %v1330_v0, %v335_v29  ;;  %v846_v50 = vadd.f32 %v718_v37, %v589_v33  ;;  %v721_v52 = vmul.f32 %v1349_v13, %v463_v34  ;;  %v467_v54 = vld [vmem:[%s1335_s26 + $0x128] sm:$0xff]  ;;  %v340_v55 = vld [vmem:[%s1327_s22 + $0x130] sm:$0xff]  ;;  %v341_v61 = vld [vmem:[%s1327_s22 + $0x138] sm:$0xff] }
  0x2d   : > { %972 = vst [vmem:[%s1367_s30 + $0xe0] sm:$0xff] %v844_v36  ;;  %v847_v51 = vadd.f32 %v719_v39, %v590_v38  ;;  %v593_v53 = vmul.f32 %v1330_v0, %v336_v35  ;;  %973 = vst [vmem:[%s1367_s30 + $0xe8] sm:$0xff] %v845_v43  ;;  %v722_v57 = vmul.f32 %v1349_v13, %v464_v40  ;;  %v468_v60 = vld [vmem:[%s1335_s26 + $0x130] sm:$0xff]  ;;  %v469_v62 = vld [vmem:[%s1335_s26 + $0x138] sm:$0xff] }
  0x2e   : > { %v848_v56 = vadd.f32 %v720_v45, %v591_v44  ;;  %v594_v58 = vmul.f32 %v1330_v0, %v337_v41  ;;  %v723_v59 = vmul.f32 %v1349_v13, %v465_v42  ;;  %974 = vst [vmem:[%s1367_s30 + $0xf0] sm:$0xff] %v846_v50  ;;  %v849_v63 = vadd.f32 %v721_v52, %v592_v46  ;;  %v342_v4 = vld [vmem:[%s1327_s22 + $0x140] sm:$0xff]  ;;  %v343_v6 = vld [vmem:[%s1327_s22 + $0x148] sm:$0xff]  ;;  %v344_v12 = vld [vmem:[%s1327_s22 + $0x150] sm:$0xff] }
  0x2f   : > { %975 = vst [vmem:[%s1367_s30 + $0xf8] sm:$0xff] %v847_v51  ;;  %v595_v1 = vmul.f32 %v1330_v0, %v338_v47  ;;  %v724_v2 = vmul.f32 %v1349_v13, %v466_v48  ;;  %v596_v3 = vmul.f32 %v1330_v0, %v339_v49  ;;  %v470_v5 = vld [vmem:[%s1335_s26 + $0x140] sm:$0xff]  ;;  %v850_v7 = vadd.f32 %v722_v57, %v593_v53  ;;  %v471_v11 = vld [vmem:[%s1335_s26 + $0x148] sm:$0xff]  ;;  %v472_v18 = vld [vmem:[%s1335_s26 + $0x150] sm:$0xff] }
  0x30   : > { %976 = vst [vmem:[%s1367_s30 + $0x100] sm:$0xff] %v848_v56  ;;  %v851_v8 = vadd.f32 %v723_v59, %v594_v58  ;;  %v725_v9 = vmul.f32 %v1349_v13, %v467_v54  ;;  %v597_v10 = vmul.f32 %v1330_v0, %v340_v55  ;;  %977 = vst [vmem:[%s1367_s30 + $0x108] sm:$0xff] %v849_v63  ;;  %v345_v19 = vld [vmem:[%s1327_s22 + $0x158] sm:$0xff]  ;;  %v346_v25 = vld [vmem:[%s1327_s22 + $0x160] sm:$0xff] }
  0x31   : > { %v852_v14 = vadd.f32 %v724_v2, %v595_v1  ;;  %v726_v15 = vmul.f32 %v1349_v13, %v468_v60  ;;  %v598_v16 = vmul.f32 %v1330_v0, %v341_v61  ;;  %v727_v17 = vmul.f32 %v1349_v13, %v469_v62  ;;  %v473_v20 = vld [vmem:[%s1335_s26 + $0x158] sm:$0xff]  ;;  %978 = vst [vmem:[%s1367_s30 + $0x110] sm:$0xff] %v850_v7  ;;  %v474_v26 = vld [vmem:[%s1335_s26 + $0x160] sm:$0xff]  ;;  %v347_v27 = vld [vmem:[%s1327_s22 + $0x168] sm:$0xff] }
  0x32   : > { %979 = vst [vmem:[%s1367_s30 + $0x118] sm:$0xff] %v851_v8  ;;  %v853_v21 = vadd.f32 %v725_v9, %v596_v3  ;;  %v599_v22 = vmul.f32 %v1330_v0, %v342_v4  ;;  %v728_v23 = vmul.f32 %v1349_v13, %v470_v5  ;;  %v600_v24 = vmul.f32 %v1330_v0, %v343_v6  ;;  %v475_v32 = vld [vmem:[%s1335_s26 + $0x168] sm:$0xff]  ;;  %v348_v33 = vld [vmem:[%s1327_s22 + $0x170] sm:$0xff]  ;;  %v349_v39 = vld [vmem:[%s1327_s22 + $0x178] sm:$0xff] }
  0x33   : > { %980 = vst [vmem:[%s1367_s30 + $0x120] sm:$0xff] %v852_v14  ;;  %v854_v28 = vadd.f32 %v726_v15, %v597_v10  ;;  %v855_v29 = vadd.f32 %v727_v17, %v598_v16  ;;  %v729_v30 = vmul.f32 %v1349_v13, %v471_v11  ;;  %v601_v31 = vmul.f32 %v1330_v0, %v344_v12  ;;  %v476_v38 = vld [vmem:[%s1335_s26 + $0x170] sm:$0xff]  ;;  %v477_v40 = vld [vmem:[%s1335_s26 + $0x178] sm:$0xff]  ;;  %v350_v45 = vld [vmem:[%s1327_s22 + $0x180] sm:$0xff] }
  0x34   : > { %981 = vst [vmem:[%s1367_s30 + $0x128] sm:$0xff] %v853_v21  ;;  %v856_v34 = vadd.f32 %v728_v23, %v599_v22  ;;  %v730_v35 = vmul.f32 %v1349_v13, %v472_v18  ;;  %v602_v36 = vmul.f32 %v1330_v0, %v345_v19  ;;  %v731_v37 = vmul.f32 %v1349_v13, %v473_v20  ;;  %v478_v46 = vld [vmem:[%s1335_s26 + $0x180] sm:$0xff]  ;;  %v351_v47 = vld [vmem:[%s1327_s22 + $0x188] sm:$0xff]  ;;  %v352_v53 = vld [vmem:[%s1327_s22 + $0x190] sm:$0xff] }
  0x35   : > { %982 = vst [vmem:[%s1367_s30 + $0x130] sm:$0xff] %v854_v28  ;;  %983 = vst [vmem:[%s1367_s30 + $0x138] sm:$0xff] %v855_v29  ;;  %v857_v41 = vadd.f32 %v729_v30, %v600_v24  ;;  %v603_v42 = vmul.f32 %v1330_v0, %v346_v25  ;;  %v732_v43 = vmul.f32 %v1349_v13, %v474_v26  ;;  %v479_v52 = vld [vmem:[%s1335_s26 + $0x188] sm:$0xff]  ;;  %v480_v58 = vld [vmem:[%s1335_s26 + $0x190] sm:$0xff] }
  0x36   : > { %v604_v44 = vmul.f32 %v1330_v0, %v347_v27  ;;  %984 = vst [vmem:[%s1367_s30 + $0x140] sm:$0xff] %v856_v34  ;;  %v858_v48 = vadd.f32 %v730_v35, %v601_v31  ;;  %v859_v49 = vadd.f32 %v731_v37, %v602_v36  ;;  %v733_v50 = vmul.f32 %v1349_v13, %v475_v32  ;;  %v353_v59 = vld [vmem:[%s1327_s22 + $0x198] sm:$0xff]  ;;  %v354_v2 = vld [vmem:[%s1327_s22 + $0x1a0] sm:$0xff]  ;;  %v355_v4 = vld [vmem:[%s1327_s22 + $0x1a8] sm:$0xff] }
  0x37   : > { %v605_v51 = vmul.f32 %v1330_v0, %v348_v33  ;;  %985 = vst [vmem:[%s1367_s30 + $0x148] sm:$0xff] %v857_v41  ;;  %v860_v54 = vadd.f32 %v732_v43, %v603_v42  ;;  %v734_v55 = vmul.f32 %v1349_v13, %v476_v38  ;;  %v606_v56 = vmul.f32 %v1330_v0, %v349_v39  ;;  %v481_v60 = vld [vmem:[%s1335_s26 + $0x198] sm:$0xff]  ;;  %v482_v3 = vld [vmem:[%s1335_s26 + $0x1a0] sm:$0xff]  ;;  %v483_v9 = vld [vmem:[%s1335_s26 + $0x1a8] sm:$0xff] }
  0x38   : > { %v735_v57 = vmul.f32 %v1349_v13, %v477_v40  ;;  %986 = vst [vmem:[%s1367_s30 + $0x150] sm:$0xff] %v858_v48  ;;  %987 = vst [vmem:[%s1367_s30 + $0x158] sm:$0xff] %v859_v49  ;;  %v861_v61 = vadd.f32 %v733_v50, %v604_v44  ;;  %v607_v62 = vmul.f32 %v1330_v0, %v350_v45  ;;  %v356_v10 = vld [vmem:[%s1327_s22 + $0x1b0] sm:$0xff]  ;;  %v357_v17 = vld [vmem:[%s1327_s22 + $0x1b8] sm:$0xff] }
  0x39   : > { %v736_v63 = vmul.f32 %v1349_v13, %v478_v46  ;;  %v608_v1 = vmul.f32 %v1330_v0, %v351_v47  ;;  %988 = vst [vmem:[%s1367_s30 + $0x160] sm:$0xff] %v860_v54  ;;  %v862_v5 = vadd.f32 %v734_v55, %v605_v51  ;;  %v737_v7 = vmul.f32 %v1349_v13, %v479_v52  ;;  %v484_v16 = vld [vmem:[%s1335_s26 + $0x1b0] sm:$0xff]  ;;  %v485_v18 = vld [vmem:[%s1335_s26 + $0x1b8] sm:$0xff]  ;;  %v358_v23 = vld [vmem:[%s1327_s22 + $0x1c0] sm:$0xff] }
  0x3a   : > { %v863_v6 = vadd.f32 %v735_v57, %v606_v56  ;;  %v609_v8 = vmul.f32 %v1330_v0, %v352_v53  ;;  %989 = vst [vmem:[%s1367_s30 + $0x168] sm:$0xff] %v861_v61  ;;  %v738_v12 = vmul.f32 %v1349_v13, %v480_v58  ;;  %v610_v14 = vmul.f32 %v1330_v0, %v353_v59  ;;  %v486_v24 = vld [vmem:[%s1335_s26 + $0x1c0] sm:$0xff]  ;;  %v359_v25 = vld [vmem:[%s1327_s22 + $0x1c8] sm:$0xff]  ;;  %v360_v31 = vld [vmem:[%s1327_s22 + $0x1d0] sm:$0xff] }
  0x3b   : > { %v864_v11 = vadd.f32 %v736_v63, %v607_v62  ;;  %v739_v15 = vmul.f32 %v1349_v13, %v481_v60  ;;  %990 = vst [vmem:[%s1367_s30 + $0x170] sm:$0xff] %v862_v5  ;;  %v865_v19 = vadd.f32 %v737_v7, %v608_v1  ;;  %v611_v20 = vmul.f32 %v1330_v0, %v354_v2  ;;  %v487_v30 = vld [vmem:[%s1335_s26 + $0x1c8] sm:$0xff]  ;;  %v488_v36 = vld [vmem:[%s1335_s26 + $0x1d0] sm:$0xff]  ;;  %v361_v37 = vld [vmem:[%s1327_s22 + $0x1d8] sm:$0xff] }
  0x3c   : > { %991 = vst [vmem:[%s1367_s30 + $0x178] sm:$0xff] %v863_v6  ;;  %v740_v21 = vmul.f32 %v1349_v13, %v482_v3  ;;  %v612_v22 = vmul.f32 %v1330_v0, %v355_v4  ;;  %v866_v26 = vadd.f32 %v738_v12, %v609_v8  ;;  %v741_v28 = vmul.f32 %v1349_v13, %v483_v9  ;;  %v489_v38 = vld [vmem:[%s1335_s26 + $0x1d8] sm:$0xff]  ;;  %v362_v43 = vld [vmem:[%s1327_s22 + $0x1e0] sm:$0xff]  ;;  %v363_v45 = vld [vmem:[%s1327_s22 + $0x1e8] sm:$0xff] }
  0x3d   : > { %992 = vst [vmem:[%s1367_s30 + $0x180] sm:$0xff] %v864_v11  ;;  %v867_v27 = vadd.f32 %v739_v15, %v610_v14  ;;  %v613_v29 = vmul.f32 %v1330_v0, %v356_v10  ;;  %993 = vst [vmem:[%s1367_s30 + $0x188] sm:$0xff] %v865_v19  ;;  %v742_v33 = vmul.f32 %v1349_v13, %v484_v16  ;;  %v490_v44 = vld [vmem:[%s1335_s26 + $0x1e0] sm:$0xff]  ;;  %v491_v50 = vld [vmem:[%s1335_s26 + $0x1e8] sm:$0xff] }
  0x3e   : > { %v868_v32 = vadd.f32 %v740_v21, %v611_v20  ;;  %v614_v34 = vmul.f32 %v1330_v0, %v357_v17  ;;  %v743_v35 = vmul.f32 %v1349_v13, %v485_v18  ;;  %994 = vst [vmem:[%s1367_s30 + $0x190] sm:$0xff] %v866_v26  ;;  %v869_v39 = vadd.f32 %v741_v28, %v612_v22  ;;  %v364_v51 = vld [vmem:[%s1327_s22 + $0x1f0] sm:$0xff]  ;;  %v365_v57 = vld [vmem:[%s1327_s22 + $0x1f8] sm:$0xff]  ;;  %v366_v63 = vld [vmem:[%s1327_s22 + $0x200] sm:$0xff] }
  0x3f   : > { %995 = vst [vmem:[%s1367_s30 + $0x198] sm:$0xff] %v867_v27  ;;  %v615_v40 = vmul.f32 %v1330_v0, %v358_v23  ;;  %v744_v41 = vmul.f32 %v1349_v13, %v486_v24  ;;  %v616_v42 = vmul.f32 %v1330_v0, %v359_v25  ;;  %v870_v46 = vadd.f32 %v742_v33, %v613_v29  ;;  %v492_v56 = vld [vmem:[%s1335_s26 + $0x1f0] sm:$0xff]  ;;  %v493_v58 = vld [vmem:[%s1335_s26 + $0x1f8] sm:$0xff]  ;;  %v494_v1 = vld [vmem:[%s1335_s26 + $0x200] sm:$0xff] }
  0x40   : > { %996 = vst [vmem:[%s1367_s30 + $0x1a0] sm:$0xff] %v868_v32  ;;  %v871_v47 = vadd.f32 %v743_v35, %v614_v34  ;;  %v745_v48 = vmul.f32 %v1349_v13, %v487_v30  ;;  %v617_v49 = vmul.f32 %v1330_v0, %v360_v31  ;;  %997 = vst [vmem:[%s1367_s30 + $0x1a8] sm:$0xff] %v869_v39  ;;  %v367_v2 = vld [vmem:[%s1327_s22 + $0x208] sm:$0xff]  ;;  %v368_v8 = vld [vmem:[%s1327_s22 + $0x210] sm:$0xff] }
  0x41   : > { %v872_v52 = vadd.f32 %v744_v41, %v615_v40  ;;  %v746_v53 = vmul.f32 %v1349_v13, %v488_v36  ;;  %v618_v54 = vmul.f32 %v1330_v0, %v361_v37  ;;  %v747_v55 = vmul.f32 %v1349_v13, %v489_v38  ;;  %998 = vst [vmem:[%s1367_s30 + $0x1b0] sm:$0xff] %v870_v46  ;;  %v495_v7 = vld [vmem:[%s1335_s26 + $0x208] sm:$0xff]  ;;  %v496_v14 = vld [vmem:[%s1335_s26 + $0x210] sm:$0xff]  ;;  %v369_v15 = vld [vmem:[%s1327_s22 + $0x218] sm:$0xff] }
  0x42   : > { %999 = vst [vmem:[%s1367_s30 + $0x1b8] sm:$0xff] %v871_v47  ;;  %v873_v59 = vadd.f32 %v745_v48, %v616_v42  ;;  %v619_v60 = vmul.f32 %v1330_v0, %v362_v43  ;;  %v748_v61 = vmul.f32 %v1349_v13, %v490_v44  ;;  %v620_v62 = vmul.f32 %v1330_v0, %v363_v45  ;;  %v497_v16 = vld [vmem:[%s1335_s26 + $0x218] sm:$0xff]  ;;  %v370_v21 = vld [vmem:[%s1327_s22 + $0x220] sm:$0xff]  ;;  %v371_v23 = vld [vmem:[%s1327_s22 + $0x228] sm:$0xff] }
  0x43   : > { %1000 = vst [vmem:[%s1367_s30 + $0x1c0] sm:$0xff] %v872_v52  ;;  %v874_v3 = vadd.f32 %v746_v53, %v617_v49  ;;  %v875_v4 = vadd.f32 %v747_v55, %v618_v54  ;;  %v749_v5 = vmul.f32 %v1349_v13, %v491_v50  ;;  %v621_v6 = vmul.f32 %v1330_v0, %v364_v51  ;;  %v498_v22 = vld [vmem:[%s1335_s26 + $0x220] sm:$0xff]  ;;  %v499_v28 = vld [vmem:[%s1335_s26 + $0x228] sm:$0xff]  ;;  %v372_v29 = vld [vmem:[%s1327_s22 + $0x230] sm:$0xff] }
  0x44   : > { %1001 = vst [vmem:[%s1367_s30 + $0x1c8] sm:$0xff] %v873_v59  ;;  %v876_v9 = vadd.f32 %v748_v61, %v619_v60  ;;  %v750_v10 = vmul.f32 %v1349_v13, %v492_v56  ;;  %v622_v11 = vmul.f32 %v1330_v0, %v365_v57  ;;  %v751_v12 = vmul.f32 %v1349_v13, %v493_v58  ;;  %v500_v34 = vld [vmem:[%s1335_s26 + $0x230] sm:$0xff]  ;;  %v373_v35 = vld [vmem:[%s1327_s22 + $0x238] sm:$0xff]  ;;  %v374_v41 = vld [vmem:[%s1327_s22 + $0x240] sm:$0xff] }
  0x45   : > { %1002 = vst [vmem:[%s1367_s30 + $0x1d0] sm:$0xff] %v874_v3  ;;  %1003 = vst [vmem:[%s1367_s30 + $0x1d8] sm:$0xff] %v875_v4  ;;  %v877_v17 = vadd.f32 %v749_v5, %v620_v62  ;;  %v623_v18 = vmul.f32 %v1330_v0, %v366_v63  ;;  %v752_v19 = vmul.f32 %v1349_v13, %v494_v1  ;;  %v501_v36 = vld [vmem:[%s1335_s26 + $0x238] sm:$0xff]  ;;  %v502_v42 = vld [vmem:[%s1335_s26 + $0x240] sm:$0xff] }
  0x46   : > { %v624_v20 = vmul.f32 %v1330_v0, %v367_v2  ;;  %1004 = vst [vmem:[%s1367_s30 + $0x1e0] sm:$0xff] %v876_v9  ;;  %v878_v24 = vadd.f32 %v750_v10, %v621_v6  ;;  %v879_v25 = vadd.f32 %v751_v12, %v622_v11  ;;  %v753_v26 = vmul.f32 %v1349_v13, %v495_v7  ;;  %v375_v43 = vld [vmem:[%s1327_s22 + $0x248] sm:$0xff]  ;;  %v376_v49 = vld [vmem:[%s1327_s22 + $0x250] sm:$0xff]  ;;  %v377_v55 = vld [vmem:[%s1327_s22 + $0x258] sm:$0xff] }
  0x47   : > { %v625_v27 = vmul.f32 %v1330_v0, %v368_v8  ;;  %1005 = vst [vmem:[%s1367_s30 + $0x1e8] sm:$0xff] %v877_v17  ;;  %v880_v30 = vadd.f32 %v752_v19, %v623_v18  ;;  %v754_v31 = vmul.f32 %v1349_v13, %v496_v14  ;;  %v626_v32 = vmul.f32 %v1330_v0, %v369_v15  ;;  %v503_v48 = vld [vmem:[%s1335_s26 + $0x248] sm:$0xff]  ;;  %v504_v54 = vld [vmem:[%s1335_s26 + $0x250] sm:$0xff]  ;;  %v505_v56 = vld [vmem:[%s1335_s26 + $0x258] sm:$0xff] }
  0x48   : > { %v755_v33 = vmul.f32 %v1349_v13, %v497_v16  ;;  %1006 = vst [vmem:[%s1367_s30 + $0x1f0] sm:$0xff] %v878_v24  ;;  %1007 = vst [vmem:[%s1367_s30 + $0x1f8] sm:$0xff] %v879_v25  ;;  %v881_v37 = vadd.f32 %v753_v26, %v624_v20  ;;  %v627_v38 = vmul.f32 %v1330_v0, %v370_v21  ;;  %v378_v61 = vld [vmem:[%s1327_s22 + $0x260] sm:$0xff]  ;;  %v379_v63 = vld [vmem:[%s1327_s22 + $0x268] sm:$0xff] }
  0x49   : > { %v756_v39 = vmul.f32 %v1349_v13, %v498_v22  ;;  %v628_v40 = vmul.f32 %v1330_v0, %v371_v23  ;;  %1008 = vst [vmem:[%s1367_s30 + $0x200] sm:$0xff] %v880_v30  ;;  %v882_v44 = vadd.f32 %v754_v31, %v625_v27  ;;  %v757_v46 = vmul.f32 %v1349_v13, %v499_v28  ;;  %v506_v62 = vld [vmem:[%s1335_s26 + $0x260] sm:$0xff]  ;;  %v507_v5 = vld [vmem:[%s1335_s26 + $0x268] sm:$0xff]  ;;  %v380_v6 = vld [vmem:[%s1327_s22 + $0x270] sm:$0xff] }
  0x4a   : > { %v883_v45 = vadd.f32 %v755_v33, %v626_v32  ;;  %v629_v47 = vmul.f32 %v1330_v0, %v372_v29  ;;  %1009 = vst [vmem:[%s1367_s30 + $0x208] sm:$0xff] %v881_v37  ;;  %v758_v51 = vmul.f32 %v1349_v13, %v500_v34  ;;  %v630_v52 = vmul.f32 %v1330_v0, %v373_v35  ;;  %v508_v11 = vld [vmem:[%s1335_s26 + $0x270] sm:$0xff]  ;;  %v381_v12 = vld [vmem:[%s1327_s22 + $0x278] sm:$0xff]  ;;  %v382_v19 = vld [vmem:[%s1327_s22 + $0x280] sm:$0xff] }
  0x4b   : > { %v884_v50 = vadd.f32 %v756_v39, %v627_v38  ;;  %v759_v53 = vmul.f32 %v1349_v13, %v501_v36  ;;  %1010 = vst [vmem:[%s1367_s30 + $0x210] sm:$0xff] %v882_v44  ;;  %v885_v57 = vadd.f32 %v757_v46, %v628_v40  ;;  %v631_v58 = vmul.f32 %v1330_v0, %v374_v41  ;;  %v509_v14 = vld [vmem:[%s1335_s26 + $0x278] sm:$0xff]  ;;  %v510_v20 = vld [vmem:[%s1335_s26 + $0x280] sm:$0xff]  ;;  %v383_v21 = vld [vmem:[%s1327_s22 + $0x288] sm:$0xff] }
  0x4c   : > { %1011 = vst [vmem:[%s1367_s30 + $0x218] sm:$0xff] %v883_v45  ;;  %v760_v59 = vmul.f32 %v1349_v13, %v502_v42  ;;  %v632_v60 = vmul.f32 %v1330_v0, %v375_v43  ;;  %v886_v1 = vadd.f32 %v758_v51, %v629_v47  ;;  %v761_v3 = vmul.f32 %v1349_v13, %v503_v48  ;;  %v511_v26 = vld [vmem:[%s1335_s26 + $0x288] sm:$0xff]  ;;  %v384_v27 = vld [vmem:[%s1327_s22 + $0x290] sm:$0xff]  ;;  %v385_v33 = vld [vmem:[%s1327_s22 + $0x298] sm:$0xff] }
  0x4d   : > { %1012 = vst [vmem:[%s1367_s30 + $0x220] sm:$0xff] %v884_v50  ;;  %v887_v2 = vadd.f32 %v759_v53, %v630_v52  ;;  %v633_v4 = vmul.f32 %v1330_v0, %v376_v49  ;;  %1013 = vst [vmem:[%s1367_s30 + $0x228] sm:$0xff] %v885_v57  ;;  %v762_v8 = vmul.f32 %v1349_v13, %v504_v54  ;;  %v512_v32 = vld [vmem:[%s1335_s26 + $0x290] sm:$0xff]  ;;  %v513_v34 = vld [vmem:[%s1335_s26 + $0x298] sm:$0xff] }
  0x4e   : > { %v888_v7 = vadd.f32 %v760_v59, %v631_v58  ;;  %v634_v9 = vmul.f32 %v1330_v0, %v377_v55  ;;  %v763_v10 = vmul.f32 %v1349_v13, %v505_v56  ;;  %1014 = vst [vmem:[%s1367_s30 + $0x230] sm:$0xff] %v886_v1  ;;  %v889_v15 = vadd.f32 %v761_v3, %v632_v60  ;;  %v386_v39 = vld [vmem:[%s1327_s22 + $0x2a0] sm:$0xff]  ;;  %v387_v41 = vld [vmem:[%s1327_s22 + $0x2a8] sm:$0xff]  ;;  %v388_v47 = vld [vmem:[%s1327_s22 + $0x2b0] sm:$0xff] }
  0x4f   : > { %1015 = vst [vmem:[%s1367_s30 + $0x238] sm:$0xff] %v887_v2  ;;  %v635_v16 = vmul.f32 %v1330_v0, %v378_v61  ;;  %v764_v17 = vmul.f32 %v1349_v13, %v506_v62  ;;  %v636_v18 = vmul.f32 %v1330_v0, %v379_v63  ;;  %v890_v22 = vadd.f32 %v762_v8, %v633_v4  ;;  %v514_v40 = vld [vmem:[%s1335_s26 + $0x2a0] sm:$0xff]  ;;  %v515_v46 = vld [vmem:[%s1335_s26 + $0x2a8] sm:$0xff]  ;;  %v516_v52 = vld [vmem:[%s1335_s26 + $0x2b0] sm:$0xff] }
  0x50   : > { %1016 = vst [vmem:[%s1367_s30 + $0x240] sm:$0xff] %v888_v7  ;;  %v891_v23 = vadd.f32 %v763_v10, %v634_v9  ;;  %v765_v24 = vmul.f32 %v1349_v13, %v507_v5  ;;  %v637_v25 = vmul.f32 %v1330_v0, %v380_v6  ;;  %1017 = vst [vmem:[%s1367_s30 + $0x248] sm:$0xff] %v889_v15  ;;  %v389_v53 = vld [vmem:[%s1327_s22 + $0x2b8] sm:$0xff]  ;;  %v390_v59 = vld [vmem:[%s1327_s22 + $0x2c0] sm:$0xff] }
  0x51   : > { %v892_v28 = vadd.f32 %v764_v17, %v635_v16  ;;  %v766_v29 = vmul.f32 %v1349_v13, %v508_v11  ;;  %v638_v30 = vmul.f32 %v1330_v0, %v381_v12  ;;  %v767_v31 = vmul.f32 %v1349_v13, %v509_v14  ;;  %1018 = vst [vmem:[%s1367_s30 + $0x250] sm:$0xff] %v890_v22  ;;  %v517_v54 = vld [vmem:[%s1335_s26 + $0x2b8] sm:$0xff]  ;;  %v518_v60 = vld [vmem:[%s1335_s26 + $0x2c0] sm:$0xff]  ;;  %v391_v61 = vld [vmem:[%s1327_s22 + $0x2c8] sm:$0xff] }
  0x52   : > { %1019 = vst [vmem:[%s1367_s30 + $0x258] sm:$0xff] %v891_v23  ;;  %v893_v35 = vadd.f32 %v765_v24, %v636_v18  ;;  %v639_v36 = vmul.f32 %v1330_v0, %v382_v19  ;;  %v768_v37 = vmul.f32 %v1349_v13, %v510_v20  ;;  %v640_v38 = vmul.f32 %v1330_v0, %v383_v21  ;;  %v519_v3 = vld [vmem:[%s1335_s26 + $0x2c8] sm:$0xff]  ;;  %v392_v4 = vld [vmem:[%s1327_s22 + $0x2d0] sm:$0xff]  ;;  %v393_v10 = vld [vmem:[%s1327_s22 + $0x2d8] sm:$0xff] }
  0x53   : > { %1020 = vst [vmem:[%s1367_s30 + $0x260] sm:$0xff] %v892_v28  ;;  %v894_v42 = vadd.f32 %v766_v29, %v637_v25  ;;  %v895_v43 = vadd.f32 %v767_v31, %v638_v30  ;;  %v769_v44 = vmul.f32 %v1349_v13, %v511_v26  ;;  %v641_v45 = vmul.f32 %v1330_v0, %v384_v27  ;;  %v520_v9 = vld [vmem:[%s1335_s26 + $0x2d0] sm:$0xff]  ;;  %v521_v11 = vld [vmem:[%s1335_s26 + $0x2d8] sm:$0xff]  ;;  %v394_v17 = vld [vmem:[%s1327_s22 + $0x2e0] sm:$0xff] }
  0x54   : > { %1021 = vst [vmem:[%s1367_s30 + $0x268] sm:$0xff] %v893_v35  ;;  %v896_v48 = vadd.f32 %v768_v37, %v639_v36  ;;  %v770_v49 = vmul.f32 %v1349_v13, %v512_v32  ;;  %v642_v50 = vmul.f32 %v1330_v0, %v385_v33  ;;  %v771_v51 = vmul.f32 %v1349_v13, %v513_v34  ;;  %v522_v18 = vld [vmem:[%s1335_s26 + $0x2e0] sm:$0xff]  ;;  %v395_v19 = vld [vmem:[%s1327_s22 + $0x2e8] sm:$0xff]  ;;  %v396_v25 = vld [vmem:[%s1327_s22 + $0x2f0] sm:$0xff] }
  0x55   : > { %1022 = vst [vmem:[%s1367_s30 + $0x270] sm:$0xff] %v894_v42  ;;  %1023 = vst [vmem:[%s1367_s30 + $0x278] sm:$0xff] %v895_v43  ;;  %v897_v55 = vadd.f32 %v769_v44, %v640_v38  ;;  %v643_v56 = vmul.f32 %v1330_v0, %v386_v39  ;;  %v772_v57 = vmul.f32 %v1349_v13, %v514_v40  ;;  %v523_v24 = vld [vmem:[%s1335_s26 + $0x2e8] sm:$0xff]  ;;  %v524_v30 = vld [vmem:[%s1335_s26 + $0x2f0] sm:$0xff] }
  0x56   : > { %v644_v58 = vmul.f32 %v1330_v0, %v387_v41  ;;  %1024 = vst [vmem:[%s1367_s30 + $0x280] sm:$0xff] %v896_v48  ;;  %v898_v62 = vadd.f32 %v770_v49, %v641_v45  ;;  %v899_v63 = vadd.f32 %v771_v51, %v642_v50  ;;  %v773_v1 = vmul.f32 %v1349_v13, %v515_v46  ;;  %v397_v31 = vld [vmem:[%s1327_s22 + $0x2f8] sm:$0xff]  ;;  %v398_v37 = vld [vmem:[%s1327_s22 + $0x300] sm:$0xff]  ;;  %v399_v39 = vld [vmem:[%s1327_s22 + $0x308] sm:$0xff] }
  0x57   : > { %v645_v2 = vmul.f32 %v1330_v0, %v388_v47  ;;  %1025 = vst [vmem:[%s1367_s30 + $0x288] sm:$0xff] %v897_v55  ;;  %v900_v5 = vadd.f32 %v772_v57, %v643_v56  ;;  %v774_v6 = vmul.f32 %v1349_v13, %v516_v52  ;;  %v646_v7 = vmul.f32 %v1330_v0, %v389_v53  ;;  %v525_v32 = vld [vmem:[%s1335_s26 + $0x2f8] sm:$0xff]  ;;  %v526_v38 = vld [vmem:[%s1335_s26 + $0x300] sm:$0xff]  ;;  %v527_v44 = vld [vmem:[%s1335_s26 + $0x308] sm:$0xff] }
  0x58   : > { %v775_v8 = vmul.f32 %v1349_v13, %v517_v54  ;;  %1026 = vst [vmem:[%s1367_s30 + $0x290] sm:$0xff] %v898_v62  ;;  %1027 = vst [vmem:[%s1367_s30 + $0x298] sm:$0xff] %v899_v63  ;;  %v901_v12 = vadd.f32 %v773_v1, %v644_v58  ;;  %v647_v14 = vmul.f32 %v1330_v0, %v390_v59  ;;  %v400_v45 = vld [vmem:[%s1327_s22 + $0x310] sm:$0xff]  ;;  %v401_v51 = vld [vmem:[%s1327_s22 + $0x318] sm:$0xff] }
  0x59   : > { %v776_v15 = vmul.f32 %v1349_v13, %v518_v60  ;;  %v648_v16 = vmul.f32 %v1330_v0, %v391_v61  ;;  %1028 = vst [vmem:[%s1367_s30 + $0x2a0] sm:$0xff] %v900_v5  ;;  %v902_v20 = vadd.f32 %v774_v6, %v645_v2  ;;  %v777_v22 = vmul.f32 %v1349_v13, %v519_v3  ;;  %v528_v50 = vld [vmem:[%s1335_s26 + $0x310] sm:$0xff]  ;;  %v529_v52 = vld [vmem:[%s1335_s26 + $0x318] sm:$0xff]  ;;  %v402_v57 = vld [vmem:[%s1327_s22 + $0x320] sm:$0xff] }
  0x5a   : > { %v903_v21 = vadd.f32 %v775_v8, %v646_v7  ;;  %v649_v23 = vmul.f32 %v1330_v0, %v392_v4  ;;  %1029 = vst [vmem:[%s1367_s30 + $0x2a8] sm:$0xff] %v901_v12  ;;  %v778_v27 = vmul.f32 %v1349_v13, %v520_v9  ;;  %v650_v28 = vmul.f32 %v1330_v0, %v393_v10  ;;  %v530_v58 = vld [vmem:[%s1335_s26 + $0x320] sm:$0xff]  ;;  %v403_v59 = vld [vmem:[%s1327_s22 + $0x328] sm:$0xff]  ;;  %v404_v2 = vld [vmem:[%s1327_s22 + $0x330] sm:$0xff] }
  0x5b   : > { %v904_v26 = vadd.f32 %v776_v15, %v647_v14  ;;  %v779_v29 = vmul.f32 %v1349_v13, %v521_v11  ;;  %1030 = vst [vmem:[%s1367_s30 + $0x2b0] sm:$0xff] %v902_v20  ;;  %v905_v33 = vadd.f32 %v777_v22, %v648_v16  ;;  %v651_v34 = vmul.f32 %v1330_v0, %v394_v17  ;;  %v531_v1 = vld [vmem:[%s1335_s26 + $0x328] sm:$0xff]  ;;  %v532_v7 = vld [vmem:[%s1335_s26 + $0x330] sm:$0xff]  ;;  %v405_v8 = vld [vmem:[%s1327_s22 + $0x338] sm:$0xff] }
  0x5c   : > { %1031 = vst [vmem:[%s1367_s30 + $0x2b8] sm:$0xff] %v903_v21  ;;  %v780_v35 = vmul.f32 %v1349_v13, %v522_v18  ;;  %v652_v36 = vmul.f32 %v1330_v0, %v395_v19  ;;  %v906_v40 = vadd.f32 %v778_v27, %v649_v23  ;;  %v781_v42 = vmul.f32 %v1349_v13, %v523_v24  ;;  %v533_v9 = vld [vmem:[%s1335_s26 + $0x338] sm:$0xff]  ;;  %v406_v15 = vld [vmem:[%s1327_s22 + $0x340] sm:$0xff]  ;;  %v407_v17 = vld [vmem:[%s1327_s22 + $0x348] sm:$0xff] }
  0x5d   : > { %1032 = vst [vmem:[%s1367_s30 + $0x2c0] sm:$0xff] %v904_v26  ;;  %v907_v41 = vadd.f32 %v779_v29, %v650_v28  ;;  %v653_v43 = vmul.f32 %v1330_v0, %v396_v25  ;;  %1033 = vst [vmem:[%s1367_s30 + $0x2c8] sm:$0xff] %v905_v33  ;;  %v782_v47 = vmul.f32 %v1349_v13, %v524_v30  ;;  %v534_v16 = vld [vmem:[%s1335_s26 + $0x340] sm:$0xff]  ;;  %v535_v22 = vld [vmem:[%s1335_s26 + $0x348] sm:$0xff] }
  0x5e   : > { %v908_v46 = vadd.f32 %v780_v35, %v651_v34  ;;  %v654_v48 = vmul.f32 %v1330_v0, %v397_v31  ;;  %v783_v49 = vmul.f32 %v1349_v13, %v525_v32  ;;  %1034 = vst [vmem:[%s1367_s30 + $0x2d0] sm:$0xff] %v906_v40  ;;  %v909_v53 = vadd.f32 %v781_v42, %v652_v36  ;;  %v408_v23 = vld [vmem:[%s1327_s22 + $0x350] sm:$0xff]  ;;  %v409_v29 = vld [vmem:[%s1327_s22 + $0x358] sm:$0xff]  ;;  %v410_v35 = vld [vmem:[%s1327_s22 + $0x360] sm:$0xff] }
  0x5f   : > { %1035 = vst [vmem:[%s1367_s30 + $0x2d8] sm:$0xff] %v907_v41  ;;  %v655_v54 = vmul.f32 %v1330_v0, %v398_v37  ;;  %v784_v55 = vmul.f32 %v1349_v13, %v526_v38  ;;  %v656_v56 = vmul.f32 %v1330_v0, %v399_v39  ;;  %v910_v60 = vadd.f32 %v782_v47, %v653_v43  ;;  %v536_v28 = vld [vmem:[%s1335_s26 + $0x350] sm:$0xff]  ;;  %v537_v30 = vld [vmem:[%s1335_s26 + $0x358] sm:$0xff]  ;;  %v538_v36 = vld [vmem:[%s1335_s26 + $0x360] sm:$0xff] }
  0x60   : > { %1036 = vst [vmem:[%s1367_s30 + $0x2e0] sm:$0xff] %v908_v46  ;;  %v911_v61 = vadd.f32 %v783_v49, %v654_v48  ;;  %v785_v62 = vmul.f32 %v1349_v13, %v527_v44  ;;  %v657_v63 = vmul.f32 %v1330_v0, %v400_v45  ;;  %1037 = vst [vmem:[%s1367_s30 + $0x2e8] sm:$0xff] %v909_v53  ;;  %v411_v37 = vld [vmem:[%s1327_s22 + $0x368] sm:$0xff]  ;;  %v412_v43 = vld [vmem:[%s1327_s22 + $0x370] sm:$0xff] }
  0x61   : > { %v912_v3 = vadd.f32 %v784_v55, %v655_v54  ;;  %v786_v4 = vmul.f32 %v1349_v13, %v528_v50  ;;  %v658_v5 = vmul.f32 %v1330_v0, %v401_v51  ;;  %v787_v6 = vmul.f32 %v1349_v13, %v529_v52  ;;  %1038 = vst [vmem:[%s1367_s30 + $0x2f0] sm:$0xff] %v910_v60  ;;  %v539_v42 = vld [vmem:[%s1335_s26 + $0x368] sm:$0xff]  ;;  %v540_v48 = vld [vmem:[%s1335_s26 + $0x370] sm:$0xff]  ;;  %v413_v49 = vld [vmem:[%s1327_s22 + $0x378] sm:$0xff] }
  0x62   : > { %1039 = vst [vmem:[%s1367_s30 + $0x2f8] sm:$0xff] %v911_v61  ;;  %v913_v10 = vadd.f32 %v785_v62, %v656_v56  ;;  %v659_v11 = vmul.f32 %v1330_v0, %v402_v57  ;;  %v788_v12 = vmul.f32 %v1349_v13, %v530_v58  ;;  %v660_v14 = vmul.f32 %v1330_v0, %v403_v59  ;;  %v541_v50 = vld [vmem:[%s1335_s26 + $0x378] sm:$0xff]  ;;  %v414_v55 = vld [vmem:[%s1327_s22 + $0x380] sm:$0xff]  ;;  %v415_v57 = vld [vmem:[%s1327_s22 + $0x388] sm:$0xff] }
  0x63   : > { %1040 = vst [vmem:[%s1367_s30 + $0x300] sm:$0xff] %v912_v3  ;;  %v914_v18 = vadd.f32 %v786_v4, %v657_v63  ;;  %v915_v19 = vadd.f32 %v787_v6, %v658_v5  ;;  %v789_v20 = vmul.f32 %v1349_v13, %v531_v1  ;;  %v661_v21 = vmul.f32 %v1330_v0, %v404_v2  ;;  %v542_v56 = vld [vmem:[%s1335_s26 + $0x380] sm:$0xff]  ;;  %v543_v62 = vld [vmem:[%s1335_s26 + $0x388] sm:$0xff]  ;;  %v416_v63 = vld [vmem:[%s1327_s22 + $0x390] sm:$0xff] }
  0x64   : > { %1041 = vst [vmem:[%s1367_s30 + $0x308] sm:$0xff] %v913_v10  ;;  %v916_v24 = vadd.f32 %v788_v12, %v659_v11  ;;  %v790_v25 = vmul.f32 %v1349_v13, %v532_v7  ;;  %v662_v26 = vmul.f32 %v1330_v0, %v405_v8  ;;  %v791_v27 = vmul.f32 %v1349_v13, %v533_v9  ;;  %v544_v5 = vld [vmem:[%s1335_s26 + $0x390] sm:$0xff]  ;;  %v417_v6 = vld [vmem:[%s1327_s22 + $0x398] sm:$0xff]  ;;  %v418_v12 = vld [vmem:[%s1327_s22 + $0x3a0] sm:$0xff] }
  0x65   : > { %1042 = vst [vmem:[%s1367_s30 + $0x310] sm:$0xff] %v914_v18  ;;  %1043 = vst [vmem:[%s1367_s30 + $0x318] sm:$0xff] %v915_v19  ;;  %v917_v31 = vadd.f32 %v789_v20, %v660_v14  ;;  %v663_v32 = vmul.f32 %v1330_v0, %v406_v15  ;;  %v792_v33 = vmul.f32 %v1349_v13, %v534_v16  ;;  %v545_v7 = vld [vmem:[%s1335_s26 + $0x398] sm:$0xff]  ;;  %v546_v14 = vld [vmem:[%s1335_s26 + $0x3a0] sm:$0xff] }
  0x66   : > { %v664_v34 = vmul.f32 %v1330_v0, %v407_v17  ;;  %1044 = vst [vmem:[%s1367_s30 + $0x320] sm:$0xff] %v916_v24  ;;  %v918_v38 = vadd.f32 %v790_v25, %v661_v21  ;;  %v919_v39 = vadd.f32 %v791_v27, %v662_v26  ;;  %v793_v40 = vmul.f32 %v1349_v13, %v535_v22  ;;  %v419_v15 = vld [vmem:[%s1327_s22 + $0x3a8] sm:$0xff]  ;;  %v420_v21 = vld [vmem:[%s1327_s22 + $0x3b0] sm:$0xff]  ;;  %v421_v27 = vld [vmem:[%s1327_s22 + $0x3b8] sm:$0xff] }
  0x67   : > { %v665_v41 = vmul.f32 %v1330_v0, %v408_v23  ;;  %1045 = vst [vmem:[%s1367_s30 + $0x328] sm:$0xff] %v917_v31  ;;  %v920_v44 = vadd.f32 %v792_v33, %v663_v32  ;;  %v794_v45 = vmul.f32 %v1349_v13, %v536_v28  ;;  %v666_v46 = vmul.f32 %v1330_v0, %v409_v29  ;;  %v547_v20 = vld [vmem:[%s1335_s26 + $0x3a8] sm:$0xff]  ;;  %v548_v26 = vld [vmem:[%s1335_s26 + $0x3b0] sm:$0xff]  ;;  %v549_v28 = vld [vmem:[%s1335_s26 + $0x3b8] sm:$0xff] }
  0x68   : > { %v795_v47 = vmul.f32 %v1349_v13, %v537_v30  ;;  %1046 = vst [vmem:[%s1367_s30 + $0x330] sm:$0xff] %v918_v38  ;;  %1047 = vst [vmem:[%s1367_s30 + $0x338] sm:$0xff] %v919_v39  ;;  %v921_v51 = vadd.f32 %v793_v40, %v664_v34  ;;  %v667_v52 = vmul.f32 %v1330_v0, %v410_v35  ;;  %v422_v33 = vld [vmem:[%s1327_s22 + $0x3c0] sm:$0xff]  ;;  %v423_v35 = vld [vmem:[%s1327_s22 + $0x3c8] sm:$0xff] }
  0x69   : > { %v796_v53 = vmul.f32 %v1349_v13, %v538_v36  ;;  %v668_v54 = vmul.f32 %v1330_v0, %v411_v37  ;;  %1048 = vst [vmem:[%s1367_s30 + $0x340] sm:$0xff] %v920_v44  ;;  %v922_v58 = vadd.f32 %v794_v45, %v665_v41  ;;  %v797_v60 = vmul.f32 %v1349_v13, %v539_v42  ;;  %v550_v34 = vld [vmem:[%s1335_s26 + $0x3c0] sm:$0xff]  ;;  %v551_v40 = vld [vmem:[%s1335_s26 + $0x3c8] sm:$0xff]  ;;  %v424_v41 = vld [vmem:[%s1327_s22 + $0x3d0] sm:$0xff] }
  0x6a   : > { %v923_v59 = vadd.f32 %v795_v47, %v666_v46  ;;  %v669_v61 = vmul.f32 %v1330_v0, %v412_v43  ;;  %1049 = vst [vmem:[%s1367_s30 + $0x348] sm:$0xff] %v921_v51  ;;  %v798_v2 = vmul.f32 %v1349_v13, %v540_v48  ;;  %v670_v3 = vmul.f32 %v1330_v0, %v413_v49  ;;  %v552_v46 = vld [vmem:[%s1335_s26 + $0x3d0] sm:$0xff]  ;;  %v425_v47 = vld [vmem:[%s1327_s22 + $0x3d8] sm:$0xff] }
  0x6b   : > { %v924_v1 = vadd.f32 %v796_v53, %v667_v52  ;;  %v799_v4 = vmul.f32 %v1349_v13, %v541_v50  ;;  %1050 = vst [vmem:[%s1367_s30 + $0x350] sm:$0xff] %v922_v58  ;;  %v925_v8 = vadd.f32 %v797_v60, %v668_v54  ;;  %v671_v9 = vmul.f32 %v1330_v0, %v414_v55  ;;  %v553_v48 = vld [vmem:[%s1335_s26 + $0x3d8] sm:$0xff]  ;;  %v426_v53 = vld [vmem:[%s1327_s22 + $0x3e0] sm:$0xff]  ;;  %v427_v55 = vld [vmem:[%s1327_s22 + $0x3e8] sm:$0xff] }
  0x6c   : > { %1051 = vst [vmem:[%s1367_s30 + $0x358] sm:$0xff] %v923_v59  ;;  %v800_v10 = vmul.f32 %v1349_v13, %v542_v56  ;;  %v672_v11 = vmul.f32 %v1330_v0, %v415_v57  ;;  %v926_v16 = vadd.f32 %v798_v2, %v669_v61  ;;  %v801_v18 = vmul.f32 %v1349_v13, %v543_v62  ;;  %v554_v54 = vld [vmem:[%s1335_s26 + $0x3e0] sm:$0xff]  ;;  %v555_v60 = vld [vmem:[%s1335_s26 + $0x3e8] sm:$0xff]  ;;  %v428_v61 = vld [vmem:[%s1327_s22 + $0x3f0] sm:$0xff] }
  0x6d   : > { %1052 = vst [vmem:[%s1367_s30 + $0x360] sm:$0xff] %v924_v1  ;;  %v927_v17 = vadd.f32 %v799_v4, %v670_v3  ;;  %v673_v19 = vmul.f32 %v1330_v0, %v416_v63  ;;  %1053 = vst [vmem:[%s1367_s30 + $0x368] sm:$0xff] %v925_v8  ;;  %v802_v23 = vmul.f32 %v1349_v13, %v544_v5  ;;  %v556_v3 = vld [vmem:[%s1335_s26 + $0x3f0] sm:$0xff]  ;;  %v429_v4 = vld [vmem:[%s1327_s22 + $0x3f8] sm:$0xff] }
  0x6e   : > { %v928_v22 = vadd.f32 %v800_v10, %v671_v9  ;;  %v674_v24 = vmul.f32 %v1330_v0, %v417_v6  ;;  %v803_v25 = vmul.f32 %v1349_v13, %v545_v7  ;;  %1054 = vst [vmem:[%s1367_s30 + $0x370] sm:$0xff] %v926_v16  ;;  %v929_v29 = vadd.f32 %v801_v18, %v672_v11  ;;  %v557_v5 = vld [vmem:[%s1335_s26 + $0x3f8] sm:$0xff] }
  0x6f   : > { %1055 = vst [vmem:[%s1367_s30 + $0x378] sm:$0xff] %v927_v17  ;;  %v675_v30 = vmul.f32 %v1330_v0, %v418_v12  ;;  %v804_v31 = vmul.f32 %v1349_v13, %v546_v14  ;;  %v676_v32 = vmul.f32 %v1330_v0, %v419_v15  ;;  %v930_v36 = vadd.f32 %v802_v23, %v673_v19 }
  0x70   : > { %1056 = vst [vmem:[%s1367_s30 + $0x380] sm:$0xff] %v928_v22  ;;  %v931_v37 = vadd.f32 %v803_v25, %v674_v24  ;;  %v805_v38 = vmul.f32 %v1349_v13, %v547_v20  ;;  %v677_v39 = vmul.f32 %v1330_v0, %v420_v21  ;;  %1057 = vst [vmem:[%s1367_s30 + $0x388] sm:$0xff] %v929_v29 }
  0x71   : > { %v932_v42 = vadd.f32 %v804_v31, %v675_v30  ;;  %v806_v43 = vmul.f32 %v1349_v13, %v548_v26  ;;  %v678_v44 = vmul.f32 %v1330_v0, %v421_v27  ;;  %v807_v45 = vmul.f32 %v1349_v13, %v549_v28  ;;  %1058 = vst [vmem:[%s1367_s30 + $0x390] sm:$0xff] %v930_v36 }
  0x72   : > { %1059 = vst [vmem:[%s1367_s30 + $0x398] sm:$0xff] %v931_v37  ;;  %v933_v49 = vadd.f32 %v805_v38, %v676_v32  ;;  %v679_v50 = vmul.f32 %v1330_v0, %v422_v33  ;;  %v808_v51 = vmul.f32 %v1349_v13, %v550_v34  ;;  %v680_v52 = vmul.f32 %v1330_v0, %v423_v35 }
  0x73   : > { %1060 = vst [vmem:[%s1367_s30 + $0x3a0] sm:$0xff] %v932_v42  ;;  %v934_v56 = vadd.f32 %v806_v43, %v677_v39  ;;  %v935_v57 = vadd.f32 %v807_v45, %v678_v44  ;;  %v809_v58 = vmul.f32 %v1349_v13, %v551_v40  ;;  %v681_v59 = vmul.f32 %v1330_v0, %v424_v41 }
  0x74   : > { %1061 = vst [vmem:[%s1367_s30 + $0x3a8] sm:$0xff] %v933_v49  ;;  %v936_v62 = vadd.f32 %v808_v51, %v679_v50  ;;  %v810_v63 = vmul.f32 %v1349_v13, %v552_v46  ;;  %v682_v1 = vmul.f32 %v1330_v0, %v425_v47  ;;  %v811_v2 = vmul.f32 %v1349_v13, %v553_v48 }
  0x75   : > { %1062 = vst [vmem:[%s1367_s30 + $0x3b0] sm:$0xff] %v934_v56  ;;  %1063 = vst [vmem:[%s1367_s30 + $0x3b8] sm:$0xff] %v935_v57  ;;  %v937_v6 = vadd.f32 %v809_v58, %v680_v52  ;;  %v683_v7 = vmul.f32 %v1330_v0, %v426_v53  ;;  %v812_v8 = vmul.f32 %v1349_v13, %v554_v54 }
  0x76   : > { %v684_v9 = vmul.f32 %v1330_v0, %v427_v55  ;;  %1064 = vst [vmem:[%s1367_s30 + $0x3c0] sm:$0xff] %v936_v62  ;;  %v938_v10 = vadd.f32 %v810_v63, %v681_v59  ;;  %v939_v11 = vadd.f32 %v811_v2, %v682_v1  ;;  %v813_v12 = vmul.f32 %v1349_v13, %v555_v60 }
  0x77   : > { %v685_v14 = vmul.f32 %v1330_v0, %v428_v61  ;;  %1065 = vst [vmem:[%s1367_s30 + $0x3c8] sm:$0xff] %v937_v6  ;;  %v940_v15 = vadd.f32 %v812_v8, %v683_v7  ;;  %v814_v16 = vmul.f32 %v1349_v13, %v556_v3  ;;  %v686_v17 = vmul.f32 %v1330_v0, %v429_v4 }
  0x78   : > { %v815_v18 = vmul.f32 %v1349_v13, %v557_v5  ;;  %1066 = vst [vmem:[%s1367_s30 + $0x3d0] sm:$0xff] %v938_v10  ;;  %1067 = vst [vmem:[%s1367_s30 + $0x3d8] sm:$0xff] %v939_v11  ;;  %v941_v19 = vadd.f32 %v813_v12, %v684_v9 }
  0x79   : > { %1068 = vst [vmem:[%s1367_s30 + $0x3e0] sm:$0xff] %v940_v15  ;;  %v942_v20 = vadd.f32 %v814_v16, %v685_v14 }
  0x7a   : > { %v943_v21 = vadd.f32 %v815_v18, %v686_v17  ;;  %1069 = vst [vmem:[%s1367_s30 + $0x3e8] sm:$0xff] %v941_v19 }
  0x7b   : > { %1070 = vst [vmem:[%s1367_s30 + $0x3f0] sm:$0xff] %v942_v20 }
  0x7c   : > { %1071 = vst [vmem:[%s1367_s30 + $0x3f8] sm:$0xff] %v943_v21 }
  0x7d PF: > { %s14_s16 = sadd.s32 1, %s1278_s16   ;;  %s1998_s14 = smov %s1274_s15 }
  0x7e   : > { %p11_p5 = scmp.ge.s32.totalorder %s14_s16, 4   ;;  %s1999_s15 = smov %s2001_s0 }
  0x80   :  { %13 = sbr.rel (!%p11_p5) target bundleno = 2 (0x2), region = 61 }

// kernel: _mix_all.4
= control target key start
LH: loop header
LB: loop body
LE: loop exit
PB: predicated region body
PF: predicated region fallthrough
CT: control target
= control target key end

     0   :  { %s647_s9 = smov 0   ;;  %s649_s10 = smov 0   ;;  %s793_s0 = inlined_call_operand.vmem [shape: f32[5,16,2048], index: 0, kind: input, shape index: {}, may-alias: {0,1}]   ;;  %s794_s1 = inlined_call_operand.vmem [shape: f32[5,16,2048], index: 1, kind: input, shape index: {}, may-alias: {0,1}]   ;;  %s795_s2 = inlined_call_operand.vmem [shape: f32[3,16,2048], index: 2, kind: output, shape index: {}]  }
   0x1   :  { %s651_s11 = smov 0  }
   0x2 LB: > { %s31_s12 = sadd.s32 1, %s626_s10  ;;  %p569_p0 = scmp.ge.s32.totalorder %s630_s11, 1  ;;  %s630_s11 = sphi %s651_s11, %s12_s11   ;;  %s626_s10 = sphi %s649_s10, %s798_s10   ;;  %s622_s9 = sphi %s647_s9, %s797_s9  }
   0x3   : > { %p33_p1 = scmp.ge.s32.totalorder %s31_s12, 3  ;;  %p187_p2 = scmp.lt.s32.totalorder %s630_s11, 4 }
   0x5   : > { %s800_s12 = smov (%p33_p1, %s31_s12), 0  ;;  %p188_p3 = pnand %p569_p0, %p187_p2 }
   0x6   : > { %p246_p4 = scmp.lt.s32.totalorder (!%p188_p3), %s622_s9, 4  ;;  %s260_s13 = sadd.s32 (!%p188_p3), 3, %s622_s9 }
   0x7   : > { %191 = sbr.rel (%p188_p3) target bundleno = 46 (0x2e), region = 28  ;;  %p665_p5 = scmp.lt.s32.totalorder (!%p188_p3), %s260_s13, 4 }
   0x8   : > { %p284_p6 = scmp.lt.s32.totalorder (!%p188_p3), %s622_s9, 2 }
   0xe   : > { %s247_s15 = scalar_select %p246_p4, %s622_s9, 4 }
   0xf   : > { %s802_s13 = smov (!%p665_p5, %s260_s13), 4  ;;  %s806_s9 = smov (!%p284_p6, %s622_s9), 2 }
  0x10   : > { %s581_s16 = sshll.u32 %s247_s15, 8  ;;  %s804_s13 = smov (!%p665_p5, %s802_s13), 4 }
  0x11   : > { %s674_s19 = scalar_lea.vmem %s793_s0, %s581_s16  ;;  %s582_s20 = sshll.u32 %s804_s13, 8 }
  0x12   : > { %v298_v0 = vld [vmem:[%s674_s19] sm:$0xff]  ;;  %v299_v1 = vld [vmem:[%s674_s19 + $0x8] sm:$0xff]  ;;  %v300_v2 = vld [vmem:[%s674_s19 + $0x10] sm:$0xff]  ;;  %s690_s23 = scalar_lea.vmem %s794_s1, %s582_s20  ;;  %s583_s24 = sshll.u32 %s806_s9, 8 }
  0x13   : > { %v301_v3 = vld [vmem:[%s674_s19 + $0x18] sm:$0xff]  ;;  %v302_v4 = vld [vmem:[%s674_s19 + $0x20] sm:$0xff]  ;;  %v303_v5 = vld [vmem:[%s674_s19 + $0x28] sm:$0xff]  ;;  %s698_s27 = scalar_lea.vmem %s795_s2, %s583_s24 }
  0x14   : > { %v304_v6 = vld [vmem:[%s674_s19 + $0x30] sm:$0xff]  ;;  %v305_v7 = vld [vmem:[%s674_s19 + $0x38] sm:$0xff]  ;;  %v306_v8 = vld [vmem:[%s674_s19 + $0x40] sm:$0xff] }
  0x15   : > { %v307_v9 = vld [vmem:[%s674_s19 + $0x48] sm:$0xff]  ;;  %v308_v10 = vld [vmem:[%s674_s19 + $0x50] sm:$0xff]  ;;  %v309_v11 = vld [vmem:[%s674_s19 + $0x58] sm:$0xff] }
  0x16   : > { %v330_v12 = vld [vmem:[%s690_s23] sm:$0xff]  ;;  %v331_v13 = vld [vmem:[%s690_s23 + $0x8] sm:$0xff]  ;;  %v332_v14 = vld [vmem:[%s690_s23 + $0x10] sm:$0xff] }
  0x17   : > { %v362_v15 = vmax.f32 %v298_v0, %v330_v12  ;;  %v363_v16 = vmax.f32 %v299_v1, %v331_v13  ;;  %v364_v17 = vmax.f32 %v300_v2, %v332_v14  ;;  %v333_v18 = vld [vmem:[%s690_s23 + $0x18] sm:$0xff]  ;;  %v334_v19 = vld [vmem:[%s690_s23 + $0x20] sm:$0xff]  ;;  %v335_v20 = vld [vmem:[%s690_s23 + $0x28] sm:$0xff] }
  0x18   : > { %v365_v21 = vmax.f32 %v301_v3, %v333_v18  ;;  %v366_v22 = vmax.f32 %v302_v4, %v334_v19  ;;  %v367_v23 = vmax.f32 %v303_v5, %v335_v20  ;;  %v336_v24 = vld [vmem:[%s690_s23 + $0x30] sm:$0xff]  ;;  %v337_v25 = vld [vmem:[%s690_s23 + $0x38] sm:$0xff]  ;;  %v338_v26 = vld [vmem:[%s690_s23 + $0x40] sm:$0xff] }
  0x19   : > { %394 = vst [vmem:[%s698_s27] sm:$0xff] %v362_v15  ;;  %395 = vst [vmem:[%s698_s27 + $0x8] sm:$0xff] %v363_v16  ;;  %v368_v27 = vmax.f32 %v304_v6, %v336_v24  ;;  %v369_v28 = vmax.f32 %v305_v7, %v337_v25  ;;  %v370_v29 = vmax.f32 %v306_v8, %v338_v26  ;;  %v339_v30 = vld [vmem:[%s690_s23 + $0x48] sm:$0xff]  ;;  %v340_v31 = vld [vmem:[%s690_s23 + $0x50] sm:$0xff] }
  0x1a   : > { %396 = vst [vmem:[%s698_s27 + $0x10] sm:$0xff] %v364_v17  ;;  %v341_v32 = vld [vmem:[%s690_s23 + $0x58] sm:$0xff]  ;;  %397 = vst [vmem:[%s698_s27 + $0x18] sm:$0xff] %v365_v21  ;;  %v371_v33 = vmax.f32 %v307_v9, %v339_v30  ;;  %v372_v34 = vmax.f32 %v308_v10, %v340_v31  ;;  %v310_v36 = vld [vmem:[%s674_s19 + $0x60] sm:$0xff] }
  0x1b   : > { %398 = vst [vmem:[%s698_s27 + $0x20] sm:$0xff] %v366_v22  ;;  %399 = vst [vmem:[%s698_s27 + $0x28] sm:$0xff] %v367_v23  ;;  %v373_v35 = vmax.f32 %v309_v11, %v341_v32  ;;  %v342_v37 = vld [vmem:[%s690_s23 + $0x60] sm:$0xff]  ;;  %v311_v38 = vld [vmem:[%s674_s19 + $0x68] sm:$0xff] }
  0x1c   : > { %400 = vst [vmem:[%s698_s27 + $0x30] sm:$0xff] %v368_v27  ;;  %401 = vst [vmem:[%s698_s27 + $0x38] sm:$0xff] %v369_v28  ;;  %v374_v39 = vmax.f32 %v310_v36, %v342_v37  ;;  %v343_v40 = vld [vmem:[%s690_s23 + $0x68] sm:$0xff]  ;;  %v312_v41 = vld [vmem:[%s674_s19 + $0x70] sm:$0xff] }
  0x1d   : > { %402 = vst [vmem:[%s698_s27 + $0x40] sm:$0xff] %v370_v29  ;;  %v344_v42 = vld [vmem:[%s690_s23 + $0x70] sm:$0xff]  ;;  %403 = vst [vmem:[%s698_s27 + $0x48] sm:$0xff] %v371_v33  ;;  %v375_v43 = vmax.f32 %v311_v38, %v343_v40  ;;  %v313_v45 = vld [vmem:[%s674_s19 + $0x78] sm:$0xff] }
  0x1e   : > { %404 = vst [vmem:[%s698_s27 + $0x50] sm:$0xff] %v372_v34  ;;  %405 = vst [vmem:[%s698_s27 + $0x58] sm:$0xff] %v373_v35  ;;  %v376_v44 = vmax.f32 %v312_v41, %v344_v42  ;;  %v345_v46 = vld [vmem:[%s690_s23 + $0x78] sm:$0xff]  ;;  %v314_v47 = vld [vmem:[%s674_s19 + $0x80] sm:$0xff] }
  0x1f   : > { %406 = vst [vmem:[%s698_s27 + $0x60] sm:$0xff] %v374_v39  ;;  %v377_v48 = vmax.f32 %v313_v45, %v345_v46  ;;  %v346_v49 = vld [vmem:[%s690_s23 + $0x80] sm:$0xff]  ;;  %v315_v50 = vld [vmem:[%s674_s19 + $0x88] sm:$0xff]  ;;  %407 = vst [vmem:[%s698_s27 + $0x68] sm:$0xff] %v375_v43 }
  0x20   : > { %v347_v51 = vld [vmem:[%s690_s23 + $0x88] sm:$0xff]  ;;  %408 = vst [vmem:[%s698_s27 + $0x70] sm:$0xff] %v376_v44  ;;  %v378_v52 = vmax.f32 %v314_v47, %v346_v49  ;;  %v316_v54 = vld [vmem:[%s674_s19 + $0x90] sm:$0xff]  ;;  %v317_v56 = vld [vmem:[%s674_s19 + $0x98] sm:$0xff] }
  0x21   : > { %v379_v53 = vmax.f32 %v315_v50, %v347_v51  ;;  %v348_v55 = vld [vmem:[%s690_s23 + $0x90] sm:$0xff]  ;;  %409 = vst [vmem:[%s698_s27 + $0x78] sm:$0xff] %v377_v48  ;;  %v349_v58 = vld [vmem:[%s690_s23 + $0x98] sm:$0xff]  ;;  %v318_v59 = vld [vmem:[%s674_s19 + $0xa0] sm:$0xff] }
  0x22   : > { %v380_v57 = vmax.f32 %v316_v54, %v348_v55  ;;  %v350_v60 = vld [vmem:[%s690_s23 + $0xa0] sm:$0xff]  ;;  %410 = vst [vmem:[%s698_s27 + $0x80] sm:$0xff] %v378_v52  ;;  %v381_v61 = vmax.f32 %v317_v56, %v349_v58  ;;  %v319_v63 = vld [vmem:[%s674_s19 + $0xa8] sm:$0xff]  ;;  %v320_v1 = vld [vmem:[%s674_s19 + $0xb0] sm:$0xff] }
  0x23   : > { %411 = vst [vmem:[%s698_s27 + $0x88] sm:$0xff] %v379_v53  ;;  %v382_v62 = vmax.f32 %v318_v59, %v350_v60  ;;  %v351_v0 = vld [vmem:[%s690_s23 + $0xa8] sm:$0xff]  ;;  %v352_v3 = vld [vmem:[%s690_s23 + $0xb0] sm:$0xff]  ;;  %v321_v4 = vld [vmem:[%s674_s19 + $0xb8] sm:$0xff] }
  0x24   : > { %412 = vst [vmem:[%s698_s27 + $0x90] sm:$0xff] %v380_v57  ;;  %v383_v2 = vmax.f32 %v319_v63, %v351_v0  ;;  %v353_v5 = vld [vmem:[%s690_s23 + $0xb8] sm:$0xff]  ;;  %413 = vst [vmem:[%s698_s27 + $0x98] sm:$0xff] %v381_v61  ;;  %v384_v6 = vmax.f32 %v320_v1, %v352_v3  ;;  %v322_v8 = vld [vmem:[%s674_s19 + $0xc0] sm:$0xff] }
  0x25   : > { %414 = vst [vmem:[%s698_s27 + $0xa0] sm:$0xff] %v382_v62  ;;  %v385_v7 = vmax.f32 %v321_v4, %v353_v5  ;;  %v354_v9 = vld [vmem:[%s690_s23 + $0xc0] sm:$0xff]  ;;  %v323_v10 = vld [vmem:[%s674_s19 + $0xc8] sm:$0xff]  ;;  %v324_v13 = vld [vmem:[%s674_s19 + $0xd0] sm:$0xff] }
  0x26   : > { %415 = vst [vmem:[%s698_s27 + $0xa8] sm:$0xff] %v383_v2  ;;  %v386_v11 = vmax.f32 %v322_v8, %v354_v9  ;;  %v355_v12 = vld [vmem:[%s690_s23 + $0xc8] sm:$0xff]  ;;  %v356_v14 = vld [vmem:[%s690_s23 + $0xd0] sm:$0xff]  ;;  %416 = vst [vmem:[%s698_s27 + $0xb0] sm:$0xff] %v384_v6 }
  0x27   : > { %417 = vst [vmem:[%s698_s27 + $0xb8] sm:$0xff] %v385_v7  ;;  %v387_v15 = vmax.f32 %v323_v10, %v355_v12  ;;  %v388_v16 = vmax.f32 %v324_v13, %v356_v14  ;;  %v325_v17 = vld [vmem:[%s674_s19 + $0xd8] sm:$0xff]  ;;  %v326_v19 = vld [vmem:[%s674_s19 + $0xe0] sm:$0xff]  ;;  %v327_v22 = vld [vmem:[%s674_s19 + $0xe8] sm:$0xff] }
  0x28   : > { %v357_v18 = vld [vmem:[%s690_s23 + $0xd8] sm:$0xff]  ;;  %418 = vst [vmem:[%s698_s27 + $0xc0] sm:$0xff] %v386_v11  ;;  %v358_v21 = vld [vmem:[%s690_s23 + $0xe0] sm:$0xff]  ;;  %v359_v23 = vld [vmem:[%s690_s23 + $0xe8] sm:$0xff] }
  0x29   : > { %v389_v20 = vmax.f32 %v325_v17, %v357_v18  ;;  %419 = vst [vmem:[%s698_s27 + $0xc8] sm:$0xff] %v387_v15  ;;  %420 = vst [vmem:[%s698_s27 + $0xd0] sm:$0xff] %v388_v16  ;;  %v390_v24 = vmax.f32 %v326_v19, %v358_v21  ;;  %v391_v25 = vmax.f32 %v327_v22, %v359_v23  ;;  %v328_v26 = vld [vmem:[%s674_s19 + $0xf0] sm:$0xff]  ;;  %v329_v28 = vld [vmem:[%s674_s19 + $0xf8] sm:$0xff] }
  0x2a   : > { %v360_v27 = vld [vmem:[%s690_s23 + $0xf0] sm:$0xff]  ;;  %v361_v30 = vld [vmem:[%s690_s23 + $0xf8] sm:$0xff] }
  0x2b   : > { %421 = vst [vmem:[%s698_s27 + $0xd8] sm:$0xff] %v389_v20  ;;  %v392_v29 = vmax.f32 %v328_v26, %v360_v27  ;;  %422 = vst [vmem:[%s698_s27 + $0xe0] sm:$0xff] %v390_v24  ;;  %v393_v31 = vmax.f32 %v329_v28, %v361_v30 }
  0x2c   : > { %423 = vst [vmem:[%s698_s27 + $0xe8] sm:$0xff] %v391_v25 }
  0x2d   : > { %424 = vst [vmem:[%s698_s27 + $0xf0] sm:$0xff] %v392_v29  ;;  %425 = vst [vmem:[%s698_s27 + $0xf8] sm:$0xff] %v393_v31 }
  0x2e PF: > { %s12_s11 = sadd.s32 1, %s630_s11   ;;  %s797_s9 = smov %s626_s10 }
  0x2f   : > { %p9_p7 = scmp.ge.s32.totalorder %s12_s11, 5   ;;  %s798_s10 = smov %s800_s12 }
  0x31   :  { %11 = sbr.rel (!%p9_p7) target bundleno = 2 (0x2), region = 61 }

// kernel: _mix_all.5
= control target key start
LH: loop header
LB: loop body
LE: loop exit
PB: predicated region body
PF: predicated region fallthrough
CT: control target
= control target key end

     0   :  { %s945_s14 = smov 0   ;;  %s947_s15 = smov 0   ;;  %s1386_s0 = inlined_call_operand.<no memory space> [shape: f32[1], index: 0, kind: input, shape index: {}]   ;;  %s1387_s1 = inlined_call_operand.vmem [shape: bf16[2,128,2048], index: 1, kind: input, shape index: {}, may-alias: {1,2}]   ;;  %s1388_s2 = inlined_call_operand.vmem [shape: bf16[2,128,2048], index: 2, kind: input, shape index: {}, may-alias: {1,2}]   ;;  %s1389_s3 = inlined_call_operand.vmem [shape: bf16[1,128,2048], index: 3, kind: output, shape index: {}]  }
   0x1   :  { %8 = sst [smem:[#allocation3]] %s1386_s0  ;;  %s949_s16 = smov 0  }
   0x2 LB: > { %s29_s0 = sadd.s32 1, %s916_s15  ;;  %p857_p0 = scmp.ge.s32.totalorder %s920_s16, 1  ;;  %s920_s16 = sphi %s949_s16, %s14_s16   ;;  %s916_s15 = sphi %s947_s15, %s1391_s15   ;;  %s912_s14 = sphi %s945_s14, %s1390_s14  }
   0x3   : > { %p31_p1 = scmp.ge.s32.totalorder %s29_s0, 2  ;;  %p189_p2 = scmp.lt.s32.totalorder %s920_s16, 3 }
   0x5   : > { %s1393_s0 = smov (%p31_p1, %s29_s0), 0  ;;  %p190_p3 = pnand %p857_p0, %p189_p2 }
   0x6   : > { %s858_s17 = sshll.u32 (!%p190_p3), %s912_s14, 3  ;;  %s300_s18 = sld [smem:[#allocation3]] (!%p190_p3) }
   0x7   : > { %193 = sbr.rel (%p190_p3) target bundleno = 80 (0x50), region = 28  ;;  %p250_p4 = scmp.lt.s32.totalorder (!%p190_p3), %s858_s17, 15 }
   0xc   : > { %p302_p5 = scmp.ne.f32.partialorder (!%p190_p3), %s300_s18, %s300_s18  ;;  %s303_s21 = sshrl.u32 (!%p190_p3), %s300_s18, 16 }
   0xd   : > { %s304_s22 = sand.u32 (!%p190_p3), 1, %s303_s21  ;;  %s311_s23 = ssub.f32 (!%p190_p3), 1.0, %s300_s18 }
   0xe   : > { %s1395_s17 = smov (!%p250_p4, %s858_s17), 15  ;;  %s305_s27 = sadd.s32 32767, %s304_s22 }
   0xf   : > { %s963_s19 = sshll.u32 %s1395_s17, 6  ;;  %s306_s4 = sadd.s32 %s305_s27, %s300_s18 }
  0x10   : > { %s871_s20 = sadd.s32 1024, %s963_s19  ;;  %s970_s26 = scalar_lea.vmem %s1387_s1, %s963_s19 }
  0x11   : > { %s975_s30 = scalar_lea.vmem %s1388_s2, %s871_s20  ;;  %s307_s5 = sand.u32 4294901760, %s306_s4  ;;  %v978_v0 = vld [vmem:[%s970_s26] sm:$0xff]  ;;  %v981_v1 = vld [vmem:[%s970_s26 + $0x8] sm:$0xff]  ;;  %v984_v2 = vld [vmem:[%s970_s26 + $0x10] sm:$0xff] }
  0x12   : > { %s314_s6 = sshrl.u32 %s311_s23, 16  ;;  %s1397_s5 = smov (%p302_p5, %s307_s5), 2143289344  ;;  %v987_v3 = vld [vmem:[%s970_s26 + $0x18] sm:$0xff]  ;;  %v990_v4 = vld [vmem:[%s970_s26 + $0x20] sm:$0xff]  ;;  %v993_v5 = vld [vmem:[%s970_s26 + $0x28] sm:$0xff] }
  0x13   : > { %p313_p6 = scmp.ne.f32.partialorder %s311_s23, %s311_s23  ;;  %s315_s7 = sand.u32 1, %s314_s6  ;;  %v996_v6 = vld [vmem:[%s970_s26 + $0x30] sm:$0xff]  ;;  %v999_v7 = vld [vmem:[%s970_s26 + $0x38] sm:$0xff]  ;;  %v1002_v8 = vld [vmem:[%s970_s26 + $0x40] sm:$0xff] }
  0x14   : > { %s310_s8 = sshrl.u32 %s1397_s5, 16  ;;  %s316_s9 = sadd.s32 32767, %s315_s7  ;;  %v1005_v9 = vld [vmem:[%s970_s26 + $0x48] sm:$0xff]  ;;  %v1013_v11 = vld [vmem:[%s970_s26 + $0x50] sm:$0xff]  ;;  %v1016_v12 = vld [vmem:[%s970_s26 + $0x58] sm:$0xff] }
  0x15   : > { %s317_s10 = sadd.s32 %s316_s9, %s311_s23  ;;  %s450_s11 = sshll.u32 %s310_s8, 16  ;;  %v1019_v13 = vld [vmem:[%s970_s26 + $0x60] sm:$0xff]  ;;  %v387_v16 = vld [vmem:[%s975_s30 + $0x8] sm:$0xff]  ;;  %v1035_v21 = vld [vmem:[%s970_s26 + $0x70] sm:$0xff] }
  0x16   : > { %s318_s12 = sand.u32 4294901760, %s317_s10  ;;  %s451_s13 = sor.u32 %s450_s11, %s310_s8  ;;  %v386_v14 = vld [vmem:[%s975_s30] sm:$0xff]  ;;  %v1032_v20 = vld [vmem:[%s970_s26 + $0x68] sm:$0xff]  ;;  %v1038_v22 = vld [vmem:[%s970_s26 + $0x78] sm:$0xff] }
  0x17   : > { %s1399_s12 = smov (%p313_p6, %s318_s12), 2143289344  ;;  %v1010_v10 = vstv %s451_s13  ;;  %v1050_v27 = vld [vmem:[%s970_s26 + $0x80] sm:$0xff]  ;;  %v1053_v28 = vld [vmem:[%s970_s26 + $0x88] sm:$0xff]  ;;  %v1056_v29 = vld [vmem:[%s970_s26 + $0x90] sm:$0xff]  ;;  %s1098_s22 = scalar_lea.vmem %s1389_s3, %s963_s19 }
  0x18   : > { %v454_v15 = vmul.bf16 %v1010_v10, %v978_v0  ;;  %v455_v17 = vmul.bf16 %v1010_v10, %v981_v1  ;;  %v456_v18 = vmul.bf16 %v1010_v10, %v984_v2  ;;  %v457_v19 = vmul.bf16 %v1010_v10, %v987_v3  ;;  %s321_s14 = sshrl.u32 %s1399_s12, 16  ;;  %v388_v30 = vld [vmem:[%s975_s30 + $0x10] sm:$0xff]  ;;  %v389_v31 = vld [vmem:[%s975_s30 + $0x18] sm:$0xff]  ;;  %v390_v32 = vld [vmem:[%s975_s30 + $0x20] sm:$0xff] }
  0x19   : > { %v458_v23 = vmul.bf16 %v1010_v10, %v990_v4  ;;  %v459_v24 = vmul.bf16 %v1010_v10, %v993_v5  ;;  %v460_v25 = vmul.bf16 %v1010_v10, %v996_v6  ;;  %v461_v26 = vmul.bf16 %v1010_v10, %v999_v7  ;;  %s518_s17 = sshll.u32 %s321_s14, 16  ;;  %v391_v37 = vld [vmem:[%s975_s30 + $0x28] sm:$0xff]  ;;  %v392_v38 = vld [vmem:[%s975_s30 + $0x30] sm:$0xff]  ;;  %v393_v39 = vld [vmem:[%s975_s30 + $0x38] sm:$0xff] }
  0x1a   : > { %v462_v33 = vmul.bf16 %v1010_v10, %v1002_v8  ;;  %v463_v34 = vmul.bf16 %v1010_v10, %v1005_v9  ;;  %v464_v35 = vmul.bf16 %v1010_v10, %v1013_v11  ;;  %v465_v36 = vmul.bf16 %v1010_v10, %v1016_v12  ;;  %s519_s18 = sor.u32 %s518_s17, %s321_s14  ;;  %v394_v52 = vld [vmem:[%s975_s30 + $0x40] sm:$0xff]  ;;  %v395_v53 = vld [vmem:[%s975_s30 + $0x48] sm:$0xff]  ;;  %v396_v58 = vld [vmem:[%s975_s30 + $0x50] sm:$0xff] }
  0x1b   : > { %v466_v40 = vmul.bf16 %v1010_v10, %v1019_v13  ;;  %v467_v41 = vmul.bf16 %v1010_v10, %v1032_v20  ;;  %v468_v42 = vmul.bf16 %v1010_v10, %v1035_v21  ;;  %v469_v43 = vmul.bf16 %v1010_v10, %v1038_v22  ;;  %v397_v59 = vld [vmem:[%s975_s30 + $0x58] sm:$0xff]  ;;  %v398_v60 = vld [vmem:[%s975_s30 + $0x60] sm:$0xff]  ;;  %v399_v1 = vld [vmem:[%s975_s30 + $0x68] sm:$0xff] }
  0x1c   : > { %v1080_v44 = vstv %s519_s18  ;;  %v470_v45 = vmul.bf16 %v1010_v10, %v1050_v27  ;;  %v471_v46 = vmul.bf16 %v1010_v10, %v1053_v28  ;;  %v472_v47 = vmul.bf16 %v1010_v10, %v1056_v29  ;;  %v400_v2 = vld [vmem:[%s975_s30 + $0x70] sm:$0xff]  ;;  %v401_v3 = vld [vmem:[%s975_s30 + $0x78] sm:$0xff]  ;;  %v402_v13 = vld [vmem:[%s975_s30 + $0x80] sm:$0xff] }
  0x1d   : > { %v522_v48 = vmul.bf16 %v1080_v44, %v386_v14  ;;  %v523_v49 = vmul.bf16 %v1080_v44, %v387_v16  ;;  %v524_v50 = vmul.bf16 %v1080_v44, %v388_v30  ;;  %v525_v51 = vmul.bf16 %v1080_v44, %v389_v31  ;;  %v403_v14 = vld [vmem:[%s975_s30 + $0x88] sm:$0xff]  ;;  %v341_v20 = vld [vmem:[%s970_s26 + $0x98] sm:$0xff]  ;;  %v406_v30 = vld [vmem:[%s975_s30 + $0xa0] sm:$0xff] }
  0x1e   : > { %v526_v54 = vmul.bf16 %v1080_v44, %v390_v32  ;;  %v527_v55 = vmul.bf16 %v1080_v44, %v391_v37  ;;  %v528_v56 = vmul.bf16 %v1080_v44, %v392_v38  ;;  %v529_v57 = vmul.bf16 %v1080_v44, %v393_v39  ;;  %v405_v21 = vld [vmem:[%s975_s30 + $0x98] sm:$0xff]  ;;  %v343_v31 = vld [vmem:[%s970_s26 + $0xa8] sm:$0xff] }
  0x1f   : > { %v586_v61 = vadd.bf16 %v522_v48, %v454_v15  ;;  %v587_v62 = vadd.bf16 %v523_v49, %v455_v17  ;;  %v588_v63 = vadd.bf16 %v524_v50, %v456_v18  ;;  %v589_v0 = vadd.bf16 %v525_v51, %v457_v19  ;;  %v404_v19 = vld [vmem:[%s975_s30 + $0x90] sm:$0xff]  ;;  %v407_v48 = vld [vmem:[%s975_s30 + $0xa8] sm:$0xff]  ;;  %v345_v51 = vld [vmem:[%s970_s26 + $0xb8] sm:$0xff] }
  0x20   : > { %v590_v4 = vadd.bf16 %v526_v54, %v458_v23  ;;  %v591_v5 = vadd.bf16 %v527_v55, %v459_v24  ;;  %v592_v6 = vadd.bf16 %v528_v56, %v460_v25  ;;  %v593_v7 = vadd.bf16 %v529_v57, %v461_v26  ;;  %v342_v26 = vld [vmem:[%s970_s26 + $0xa0] sm:$0xff] }
  0x21   : > { %650 = vst [vmem:[%s1098_s22] sm:$0xff] %v586_v61  ;;  %651 = vst [vmem:[%s1098_s22 + $0x8] sm:$0xff] %v587_v62  ;;  %v530_v8 = vmul.bf16 %v1080_v44, %v394_v52  ;;  %v531_v9 = vmul.bf16 %v1080_v44, %v395_v53  ;;  %v532_v11 = vmul.bf16 %v1080_v44, %v396_v58  ;;  %v409_v52 = vld [vmem:[%s975_s30 + $0xb8] sm:$0xff]  ;;  %v346_v53 = vld [vmem:[%s970_s26 + $0xc0] sm:$0xff] }
  0x22   : > { %652 = vst [vmem:[%s1098_s22 + $0x10] sm:$0xff] %v588_v63  ;;  %653 = vst [vmem:[%s1098_s22 + $0x18] sm:$0xff] %v589_v0  ;;  %v533_v12 = vmul.bf16 %v1080_v44, %v397_v59  ;;  %v534_v15 = vmul.bf16 %v1080_v44, %v398_v60  ;;  %v535_v16 = vmul.bf16 %v1080_v44, %v399_v1  ;;  %v410_v58 = vld [vmem:[%s975_s30 + $0xc0] sm:$0xff]  ;;  %v347_v59 = vld [vmem:[%s970_s26 + $0xc8] sm:$0xff] }
  0x23   : > { %654 = vst [vmem:[%s1098_s22 + $0x20] sm:$0xff] %v590_v4  ;;  %655 = vst [vmem:[%s1098_s22 + $0x28] sm:$0xff] %v591_v5  ;;  %v536_v17 = vmul.bf16 %v1080_v44, %v400_v2  ;;  %v537_v18 = vmul.bf16 %v1080_v44, %v401_v3  ;;  %v594_v22 = vadd.bf16 %v530_v8, %v462_v33  ;;  %v411_v60 = vld [vmem:[%s975_s30 + $0xc8] sm:$0xff]  ;;  %v412_v62 = vld [vmem:[%s975_s30 + $0xd0] sm:$0xff] }
  0x24   : > { %656 = vst [vmem:[%s1098_s22 + $0x30] sm:$0xff] %v592_v6  ;;  %657 = vst [vmem:[%s1098_s22 + $0x38] sm:$0xff] %v593_v7  ;;  %v595_v23 = vadd.bf16 %v531_v9, %v463_v34  ;;  %v596_v24 = vadd.bf16 %v532_v11, %v464_v35  ;;  %v597_v25 = vadd.bf16 %v533_v12, %v465_v36  ;;  %v349_v63 = vld [vmem:[%s970_s26 + $0xd8] sm:$0xff]  ;;  %v350_v3 = vld [vmem:[%s970_s26 + $0xe0] sm:$0xff] }
  0x25   : > { %v598_v32 = vadd.bf16 %v534_v15, %v466_v40  ;;  %v599_v37 = vadd.bf16 %v535_v16, %v467_v41  ;;  %v600_v38 = vadd.bf16 %v536_v17, %v468_v42  ;;  %v601_v39 = vadd.bf16 %v537_v18, %v469_v43  ;;  %658 = vst [vmem:[%s1098_s22 + $0x40] sm:$0xff] %v594_v22  ;;  %v344_v40 = vld [vmem:[%s970_s26 + $0xb0] sm:$0xff]  ;;  %v413_v2 = vld [vmem:[%s975_s30 + $0xd8] sm:$0xff]  ;;  %v414_v8 = vld [vmem:[%s975_s30 + $0xe0] sm:$0xff] }
  0x26   : > { %659 = vst [vmem:[%s1098_s22 + $0x48] sm:$0xff] %v595_v23  ;;  %660 = vst [vmem:[%s1098_s22 + $0x50] sm:$0xff] %v596_v24  ;;  %v538_v33 = vmul.bf16 %v1080_v44, %v402_v13  ;;  %v539_v34 = vmul.bf16 %v1080_v44, %v403_v14  ;;  %v540_v35 = vmul.bf16 %v1080_v44, %v404_v19  ;;  %v408_v41 = vld [vmem:[%s975_s30 + $0xb0] sm:$0xff]  ;;  %v351_v9 = vld [vmem:[%s970_s26 + $0xe8] sm:$0xff] }
  0x27   : > { %661 = vst [vmem:[%s1098_s22 + $0x58] sm:$0xff] %v597_v25  ;;  %v473_v36 = vmul.bf16 %v1010_v10, %v341_v20  ;;  %662 = vst [vmem:[%s1098_s22 + $0x60] sm:$0xff] %v598_v32  ;;  %v541_v42 = vmul.bf16 %v1080_v44, %v405_v21  ;;  %v474_v43 = vmul.bf16 %v1010_v10, %v342_v26  ;;  %v415_v11 = vld [vmem:[%s975_s30 + $0xe8] sm:$0xff]  ;;  %v352_v16 = vld [vmem:[%s970_s26 + $0xf0] sm:$0xff] }
  0x28   : > { %663 = vst [vmem:[%s1098_s22 + $0x68] sm:$0xff] %v599_v37  ;;  %664 = vst [vmem:[%s1098_s22 + $0x70] sm:$0xff] %v600_v38  ;;  %v542_v49 = vmul.bf16 %v1080_v44, %v406_v30  ;;  %v475_v50 = vmul.bf16 %v1010_v10, %v343_v31  ;;  %v602_v54 = vadd.bf16 %v538_v33, %v470_v45  ;;  %v416_v17 = vld [vmem:[%s975_s30 + $0xf0] sm:$0xff]  ;;  %v353_v18 = vld [vmem:[%s970_s26 + $0xf8] sm:$0xff] }
  0x29   : > { %665 = vst [vmem:[%s1098_s22 + $0x78] sm:$0xff] %v601_v39  ;;  %v603_v55 = vadd.bf16 %v539_v34, %v471_v46  ;;  %v604_v56 = vadd.bf16 %v540_v35, %v472_v47  ;;  %v543_v57 = vmul.bf16 %v1080_v44, %v407_v48  ;;  %v605_v61 = vadd.bf16 %v541_v42, %v473_v36  ;;  %v348_v46 = vld [vmem:[%s970_s26 + $0xd0] sm:$0xff]  ;;  %v417_v23 = vld [vmem:[%s975_s30 + $0xf8] sm:$0xff]  ;;  %v354_v24 = vld [vmem:[%s970_s26 + $0x100] sm:$0xff] }
  0x2a   : > { %v606_v27 = vadd.bf16 %v542_v49, %v474_v43  ;;  %v476_v45 = vmul.bf16 %v1010_v10, %v344_v40  ;;  %v544_v28 = vmul.bf16 %v1080_v44, %v408_v41  ;;  %666 = vst [vmem:[%s1098_s22 + $0x80] sm:$0xff] %v602_v54  ;;  %v477_v47 = vmul.bf16 %v1010_v10, %v345_v51  ;;  %v418_v32 = vld [vmem:[%s975_s30 + $0x100] sm:$0xff]  ;;  %v355_v37 = vld [vmem:[%s970_s26 + $0x108] sm:$0xff]  ;;  %v356_v35 = vld [vmem:[%s970_s26 + $0x110] sm:$0xff] }
  0x2b   : > { %667 = vst [vmem:[%s1098_s22 + $0x88] sm:$0xff] %v603_v55  ;;  %668 = vst [vmem:[%s1098_s22 + $0x90] sm:$0xff] %v604_v56  ;;  %v607_v29 = vadd.bf16 %v543_v57, %v475_v50  ;;  %v545_v0 = vmul.bf16 %v1080_v44, %v409_v52  ;;  %v478_v1 = vmul.bf16 %v1010_v10, %v346_v53  ;;  %v419_v38 = vld [vmem:[%s975_s30 + $0x108] sm:$0xff]  ;;  %v420_v36 = vld [vmem:[%s975_s30 + $0x110] sm:$0xff] }
  0x2c   : > { %669 = vst [vmem:[%s1098_s22 + $0x98] sm:$0xff] %v605_v61  ;;  %670 = vst [vmem:[%s1098_s22 + $0xa0] sm:$0xff] %v606_v27  ;;  %v608_v4 = vadd.bf16 %v544_v28, %v476_v45  ;;  %v546_v5 = vmul.bf16 %v1080_v44, %v410_v58  ;;  %v479_v6 = vmul.bf16 %v1010_v10, %v347_v59  ;;  %v357_v40 = vld [vmem:[%s970_s26 + $0x118] sm:$0xff]  ;;  %v358_v51 = vld [vmem:[%s970_s26 + $0x120] sm:$0xff] }
  0x2d   : > { %v547_v7 = vmul.bf16 %v1080_v44, %v411_v60  ;;  %671 = vst [vmem:[%s1098_s22 + $0xa8] sm:$0xff] %v607_v29  ;;  %v609_v12 = vadd.bf16 %v545_v0, %v477_v47  ;;  %v480_v13 = vmul.bf16 %v1010_v10, %v348_v46  ;;  %v548_v14 = vmul.bf16 %v1080_v44, %v412_v62  ;;  %v421_v50 = vld [vmem:[%s975_s30 + $0x118] sm:$0xff]  ;;  %v422_v56 = vld [vmem:[%s975_s30 + $0x120] sm:$0xff]  ;;  %v359_v57 = vld [vmem:[%s970_s26 + $0x128] sm:$0xff] }
  0x2e   : > { %v481_v15 = vmul.bf16 %v1010_v10, %v349_v63  ;;  %672 = vst [vmem:[%s1098_s22 + $0xb0] sm:$0xff] %v608_v4  ;;  %v610_v19 = vadd.bf16 %v546_v5, %v478_v1  ;;  %v549_v21 = vmul.bf16 %v1080_v44, %v413_v2  ;;  %v482_v22 = vmul.bf16 %v1010_v10, %v350_v3  ;;  %v423_v58 = vld [vmem:[%s975_s30 + $0x128] sm:$0xff]  ;;  %v360_v45 = vld [vmem:[%s970_s26 + $0x130] sm:$0xff]  ;;  %v361_v46 = vld [vmem:[%s970_s26 + $0x138] sm:$0xff] }
  0x2f   : > { %v611_v20 = vadd.bf16 %v547_v7, %v479_v6  ;;  %673 = vst [vmem:[%s1098_s22 + $0xb8] sm:$0xff] %v609_v12  ;;  %v612_v25 = vadd.bf16 %v548_v14, %v480_v13  ;;  %v550_v26 = vmul.bf16 %v1080_v44, %v414_v8  ;;  %v483_v30 = vmul.bf16 %v1010_v10, %v351_v9  ;;  %v424_v28 = vld [vmem:[%s975_s30 + $0x130] sm:$0xff]  ;;  %v425_v0 = vld [vmem:[%s975_s30 + $0x138] sm:$0xff]  ;;  %v362_v1 = vld [vmem:[%s970_s26 + $0x140] sm:$0xff] }
  0x30   : > { %v551_v31 = vmul.bf16 %v1080_v44, %v415_v11  ;;  %674 = vst [vmem:[%s1098_s22 + $0xc0] sm:$0xff] %v610_v19  ;;  %v613_v39 = vadd.bf16 %v549_v21, %v481_v15  ;;  %v484_v48 = vmul.bf16 %v1010_v10, %v352_v16  ;;  %v552_v33 = vmul.bf16 %v1080_v44, %v416_v17  ;;  %v426_v6 = vld [vmem:[%s975_s30 + $0x140] sm:$0xff]  ;;  %v363_v7 = vld [vmem:[%s970_s26 + $0x148] sm:$0xff]  ;;  %v364_v14 = vld [vmem:[%s970_s26 + $0x150] sm:$0xff] }
  0x31   : > { %675 = vst [vmem:[%s1098_s22 + $0xc8] sm:$0xff] %v611_v20  ;;  %v485_v34 = vmul.bf16 %v1010_v10, %v353_v18  ;;  %676 = vst [vmem:[%s1098_s22 + $0xd0] sm:$0xff] %v612_v25  ;;  %v614_v41 = vadd.bf16 %v550_v26, %v482_v22  ;;  %v553_v43 = vmul.bf16 %v1080_v44, %v417_v23  ;;  %v427_v8 = vld [vmem:[%s975_s30 + $0x148] sm:$0xff]  ;;  %v428_v15 = vld [vmem:[%s975_s30 + $0x150] sm:$0xff] }
  0x32   : > { %v615_v42 = vadd.bf16 %v551_v31, %v483_v30  ;;  %v486_v49 = vmul.bf16 %v1010_v10, %v354_v24  ;;  %677 = vst [vmem:[%s1098_s22 + $0xd8] sm:$0xff] %v613_v39  ;;  %v616_v52 = vadd.bf16 %v552_v33, %v484_v48  ;;  %v554_v53 = vmul.bf16 %v1080_v44, %v418_v32  ;;  %v365_v16 = vld [vmem:[%s970_s26 + $0x158] sm:$0xff]  ;;  %v366_v22 = vld [vmem:[%s970_s26 + $0x160] sm:$0xff]  ;;  %v367_v31 = vld [vmem:[%s970_s26 + $0x168] sm:$0xff] }
  0x33   : > { %v487_v54 = vmul.bf16 %v1010_v10, %v355_v37  ;;  %v555_v55 = vmul.bf16 %v1080_v44, %v419_v38  ;;  %678 = vst [vmem:[%s1098_s22 + $0xe0] sm:$0xff] %v614_v41  ;;  %v617_v59 = vadd.bf16 %v553_v43, %v485_v34  ;;  %v488_v60 = vmul.bf16 %v1010_v10, %v356_v35  ;;  %v429_v21 = vld [vmem:[%s975_s30 + $0x158] sm:$0xff]  ;;  %v430_v30 = vld [vmem:[%s975_s30 + $0x160] sm:$0xff]  ;;  %v431_v32 = vld [vmem:[%s975_s30 + $0x168] sm:$0xff] }
  0x34   : > { %679 = vst [vmem:[%s1098_s22 + $0xe8] sm:$0xff] %v615_v42  ;;  %v556_v61 = vmul.bf16 %v1080_v44, %v420_v36  ;;  %v489_v27 = vmul.bf16 %v1010_v10, %v357_v40  ;;  %680 = vst [vmem:[%s1098_s22 + $0xf0] sm:$0xff] %v616_v52  ;;  %v618_v62 = vadd.bf16 %v554_v53, %v486_v49  ;;  %v368_v33 = vld [vmem:[%s970_s26 + $0x170] sm:$0xff]  ;;  %v369_v35 = vld [vmem:[%s970_s26 + $0x178] sm:$0xff] }
  0x35   : > { %v619_v63 = vadd.bf16 %v555_v55, %v487_v54  ;;  %v557_v29 = vmul.bf16 %v1080_v44, %v421_v50  ;;  %v490_v47 = vmul.bf16 %v1010_v10, %v358_v51  ;;  %681 = vst [vmem:[%s1098_s22 + $0xf8] sm:$0xff] %v617_v59  ;;  %v558_v3 = vmul.bf16 %v1080_v44, %v422_v56  ;;  %v432_v34 = vld [vmem:[%s975_s30 + $0x170] sm:$0xff]  ;;  %v433_v43 = vld [vmem:[%s975_s30 + $0x178] sm:$0xff]  ;;  %v370_v49 = vld [vmem:[%s970_s26 + $0x180] sm:$0xff] }
  0x36   : > { %v620_v2 = vadd.bf16 %v556_v61, %v488_v60  ;;  %v491_v4 = vmul.bf16 %v1010_v10, %v359_v57  ;;  %v559_v5 = vmul.bf16 %v1080_v44, %v423_v58  ;;  %682 = vst [vmem:[%s1098_s22 + $0x100] sm:$0xff] %v618_v62  ;;  %v492_v11 = vmul.bf16 %v1010_v10, %v360_v45  ;;  %v434_v54 = vld [vmem:[%s975_s30 + $0x180] sm:$0xff]  ;;  %v371_v55 = vld [vmem:[%s970_s26 + $0x188] sm:$0xff]  ;;  %v372_v61 = vld [vmem:[%s970_s26 + $0x190] sm:$0xff] }
  0x37   : > { %683 = vst [vmem:[%s1098_s22 + $0x108] sm:$0xff] %v619_v63  ;;  %v621_v9 = vadd.bf16 %v557_v29, %v489_v27  ;;  %v560_v12 = vmul.bf16 %v1080_v44, %v424_v28  ;;  %v493_v13 = vmul.bf16 %v1010_v10, %v361_v46  ;;  %v622_v17 = vadd.bf16 %v558_v3, %v490_v47  ;;  %v435_v56 = vld [vmem:[%s975_s30 + $0x188] sm:$0xff]  ;;  %v436_v27 = vld [vmem:[%s975_s30 + $0x190] sm:$0xff]  ;;  %v373_v45 = vld [vmem:[%s970_s26 + $0x198] sm:$0xff] }
  0x38   : > { %684 = vst [vmem:[%s1098_s22 + $0x110] sm:$0xff] %v620_v2  ;;  %v623_v18 = vadd.bf16 %v559_v5, %v491_v4  ;;  %v561_v19 = vmul.bf16 %v1080_v44, %v425_v0  ;;  %v494_v20 = vmul.bf16 %v1010_v10, %v362_v1  ;;  %v562_v24 = vmul.bf16 %v1080_v44, %v426_v6  ;;  %v437_v29 = vld [vmem:[%s975_s30 + $0x198] sm:$0xff]  ;;  %v374_v47 = vld [vmem:[%s970_s26 + $0x1a0] sm:$0xff]  ;;  %v375_v5 = vld [vmem:[%s970_s26 + $0x1a8] sm:$0xff] }
  0x39   : > { %685 = vst [vmem:[%s1098_s22 + $0x118] sm:$0xff] %v621_v9  ;;  %v624_v23 = vadd.bf16 %v560_v12, %v492_v11  ;;  %v495_v25 = vmul.bf16 %v1010_v10, %v363_v7  ;;  %v563_v26 = vmul.bf16 %v1080_v44, %v427_v8  ;;  %686 = vst [vmem:[%s1098_s22 + $0x120] sm:$0xff] %v622_v17  ;;  %v438_v4 = vld [vmem:[%s975_s30 + $0x1a0] sm:$0xff]  ;;  %v439_v6 = vld [vmem:[%s975_s30 + $0x1a8] sm:$0xff] }
  0x3a   : > { %687 = vst [vmem:[%s1098_s22 + $0x128] sm:$0xff] %v623_v18  ;;  %v625_v37 = vadd.bf16 %v561_v19, %v493_v13  ;;  %v496_v38 = vmul.bf16 %v1010_v10, %v364_v14  ;;  %v564_v39 = vmul.bf16 %v1080_v44, %v428_v15  ;;  %v497_v48 = vmul.bf16 %v1010_v10, %v365_v16  ;;  %v376_v12 = vld [vmem:[%s970_s26 + $0x1b0] sm:$0xff]  ;;  %v377_v14 = vld [vmem:[%s970_s26 + $0x1b8] sm:$0xff] }
  0x3b   : > { %688 = vst [vmem:[%s1098_s22 + $0x130] sm:$0xff] %v624_v23  ;;  %v626_v36 = vadd.bf16 %v562_v24, %v494_v20  ;;  %v627_v40 = vadd.bf16 %v563_v26, %v495_v25  ;;  %v565_v41 = vmul.bf16 %v1080_v44, %v429_v21  ;;  %v498_v42 = vmul.bf16 %v1010_v10, %v366_v22  ;;  %v440_v13 = vld [vmem:[%s975_s30 + $0x1b0] sm:$0xff]  ;;  %v441_v19 = vld [vmem:[%s975_s30 + $0x1b8] sm:$0xff]  ;;  %v378_v20 = vld [vmem:[%s970_s26 + $0x1c0] sm:$0xff] }
  0x3c   : > { %689 = vst [vmem:[%s1098_s22 + $0x138] sm:$0xff] %v625_v37  ;;  %v628_v50 = vadd.bf16 %v564_v39, %v496_v38  ;;  %v566_v51 = vmul.bf16 %v1080_v44, %v430_v30  ;;  %v499_v52 = vmul.bf16 %v1010_v10, %v367_v31  ;;  %v567_v53 = vmul.bf16 %v1080_v44, %v431_v32  ;;  %v442_v25 = vld [vmem:[%s975_s30 + $0x1c0] sm:$0xff]  ;;  %v379_v26 = vld [vmem:[%s970_s26 + $0x1c8] sm:$0xff]  ;;  %v380_v39 = vld [vmem:[%s970_s26 + $0x1d0] sm:$0xff] }
  0x3d   : > { %690 = vst [vmem:[%s1098_s22 + $0x140] sm:$0xff] %v626_v36  ;;  %691 = vst [vmem:[%s1098_s22 + $0x148] sm:$0xff] %v627_v40  ;;  %v629_v57 = vadd.bf16 %v565_v41, %v497_v48  ;;  %v500_v58 = vmul.bf16 %v1010_v10, %v368_v33  ;;  %v568_v59 = vmul.bf16 %v1080_v44, %v432_v34  ;;  %v443_v30 = vld [vmem:[%s975_s30 + $0x1c8] sm:$0xff]  ;;  %v444_v48 = vld [vmem:[%s975_s30 + $0x1d0] sm:$0xff] }
  0x3e   : > { %v501_v60 = vmul.bf16 %v1010_v10, %v369_v35  ;;  %692 = vst [vmem:[%s1098_s22 + $0x150] sm:$0xff] %v628_v50  ;;  %v630_v28 = vadd.bf16 %v566_v51, %v498_v42  ;;  %v631_v46 = vadd.bf16 %v567_v53, %v499_v52  ;;  %v569_v62 = vmul.bf16 %v1080_v44, %v433_v43  ;;  %v381_v33 = vld [vmem:[%s970_s26 + $0x1d8] sm:$0xff]  ;;  %v382_v42 = vld [vmem:[%s970_s26 + $0x1e0] sm:$0xff]  ;;  %v383_v53 = vld [vmem:[%s970_s26 + $0x1e8] sm:$0xff] }
  0x3f   : > { %v502_v63 = vmul.bf16 %v1010_v10, %v370_v49  ;;  %693 = vst [vmem:[%s1098_s22 + $0x158] sm:$0xff] %v629_v57  ;;  %v632_v0 = vadd.bf16 %v568_v59, %v500_v58  ;;  %v570_v1 = vmul.bf16 %v1080_v44, %v434_v54  ;;  %v503_v2 = vmul.bf16 %v1010_v10, %v371_v55  ;;  %v445_v41 = vld [vmem:[%s975_s30 + $0x1d8] sm:$0xff]  ;;  %v446_v52 = vld [vmem:[%s975_s30 + $0x1e0] sm:$0xff]  ;;  %v447_v54 = vld [vmem:[%s975_s30 + $0x1e8] sm:$0xff] }
  0x40   : > { %v571_v3 = vmul.bf16 %v1080_v44, %v435_v56  ;;  %694 = vst [vmem:[%s1098_s22 + $0x160] sm:$0xff] %v630_v28  ;;  %695 = vst [vmem:[%s1098_s22 + $0x168] sm:$0xff] %v631_v46  ;;  %v633_v7 = vadd.bf16 %v569_v62, %v501_v60  ;;  %v504_v8 = vmul.bf16 %v1010_v10, %v372_v61  ;;  %v384_v59 = vld [vmem:[%s970_s26 + $0x1f0] sm:$0xff]  ;;  %v385_v61 = vld [vmem:[%s970_s26 + $0x1f8] sm:$0xff] }
  0x41   : > { %v572_v9 = vmul.bf16 %v1080_v44, %v436_v27  ;;  %v505_v11 = vmul.bf16 %v1010_v10, %v373_v45  ;;  %696 = vst [vmem:[%s1098_s22 + $0x170] sm:$0xff] %v632_v0  ;;  %v634_v15 = vadd.bf16 %v570_v1, %v502_v63  ;;  %v573_v17 = vmul.bf16 %v1080_v44, %v437_v29  ;;  %v448_v60 = vld [vmem:[%s975_s30 + $0x1f0] sm:$0xff]  ;;  %v449_v62 = vld [vmem:[%s975_s30 + $0x1f8] sm:$0xff] }
  0x42   : > { %v635_v16 = vadd.bf16 %v571_v3, %v503_v2  ;;  %v506_v18 = vmul.bf16 %v1010_v10, %v374_v47  ;;  %697 = vst [vmem:[%s1098_s22 + $0x178] sm:$0xff] %v633_v7  ;;  %v574_v22 = vmul.bf16 %v1080_v44, %v438_v4  ;;  %v507_v23 = vmul.bf16 %v1010_v10, %v375_v5 }
  0x43   : > { %v636_v21 = vadd.bf16 %v572_v9, %v504_v8  ;;  %v575_v24 = vmul.bf16 %v1080_v44, %v439_v6  ;;  %698 = vst [vmem:[%s1098_s22 + $0x180] sm:$0xff] %v634_v15  ;;  %v637_v31 = vadd.bf16 %v573_v17, %v505_v11  ;;  %v508_v32 = vmul.bf16 %v1010_v10, %v376_v12 }
  0x44   : > { %699 = vst [vmem:[%s1098_s22 + $0x188] sm:$0xff] %v635_v16  ;;  %v576_v37 = vmul.bf16 %v1080_v44, %v440_v13  ;;  %v509_v38 = vmul.bf16 %v1010_v10, %v377_v14  ;;  %v638_v34 = vadd.bf16 %v574_v22, %v506_v18  ;;  %v577_v36 = vmul.bf16 %v1080_v44, %v441_v19 }
  0x45   : > { %700 = vst [vmem:[%s1098_s22 + $0x190] sm:$0xff] %v636_v21  ;;  %v639_v35 = vadd.bf16 %v575_v24, %v507_v23  ;;  %v510_v40 = vmul.bf16 %v1010_v10, %v378_v20  ;;  %701 = vst [vmem:[%s1098_s22 + $0x198] sm:$0xff] %v637_v31  ;;  %v578_v49 = vmul.bf16 %v1080_v44, %v442_v25 }
  0x46   : > { %v640_v43 = vadd.bf16 %v576_v37, %v508_v32  ;;  %v511_v50 = vmul.bf16 %v1010_v10, %v379_v26  ;;  %v579_v51 = vmul.bf16 %v1080_v44, %v443_v30  ;;  %702 = vst [vmem:[%s1098_s22 + $0x1a0] sm:$0xff] %v638_v34  ;;  %v641_v55 = vadd.bf16 %v577_v36, %v509_v38 }
  0x47   : > { %703 = vst [vmem:[%s1098_s22 + $0x1a8] sm:$0xff] %v639_v35  ;;  %v512_v56 = vmul.bf16 %v1010_v10, %v380_v39  ;;  %v580_v57 = vmul.bf16 %v1080_v44, %v444_v48  ;;  %v513_v58 = vmul.bf16 %v1010_v10, %v381_v33  ;;  %v642_v27 = vadd.bf16 %v578_v49, %v510_v40 }
  0x48   : > { %704 = vst [vmem:[%s1098_s22 + $0x1b0] sm:$0xff] %v640_v43  ;;  %v643_v45 = vadd.bf16 %v579_v51, %v511_v50  ;;  %v581_v28 = vmul.bf16 %v1080_v44, %v445_v41  ;;  %v514_v46 = vmul.bf16 %v1010_v10, %v382_v42  ;;  %705 = vst [vmem:[%s1098_s22 + $0x1b8] sm:$0xff] %v641_v55 }
  0x49   : > { %v644_v63 = vadd.bf16 %v580_v57, %v512_v56  ;;  %v582_v29 = vmul.bf16 %v1080_v44, %v446_v52  ;;  %v515_v47 = vmul.bf16 %v1010_v10, %v383_v53  ;;  %v583_v0 = vmul.bf16 %v1080_v44, %v447_v54  ;;  %706 = vst [vmem:[%s1098_s22 + $0x1c0] sm:$0xff] %v642_v27 }
  0x4a   : > { %707 = vst [vmem:[%s1098_s22 + $0x1c8] sm:$0xff] %v643_v45  ;;  %v645_v1 = vadd.bf16 %v581_v28, %v513_v58  ;;  %v516_v2 = vmul.bf16 %v1010_v10, %v384_v59  ;;  %v584_v3 = vmul.bf16 %v1080_v44, %v448_v60  ;;  %v517_v4 = vmul.bf16 %v1010_v10, %v385_v61 }
  0x4b   : > { %708 = vst [vmem:[%s1098_s22 + $0x1d0] sm:$0xff] %v644_v63  ;;  %v646_v5 = vadd.bf16 %v582_v29, %v514_v46  ;;  %v647_v6 = vadd.bf16 %v583_v0, %v515_v47  ;;  %v585_v7 = vmul.bf16 %v1080_v44, %v449_v62 }
  0x4c   : > { %709 = vst [vmem:[%s1098_s22 + $0x1d8] sm:$0xff] %v645_v1  ;;  %v648_v8 = vadd.bf16 %v584_v3, %v516_v2 }
  0x4d   : > { %710 = vst [vmem:[%s1098_s22 + $0x1e0] sm:$0xff] %v646_v5  ;;  %711 = vst [vmem:[%s1098_s22 + $0x1e8] sm:$0xff] %v647_v6  ;;  %v649_v9 = vadd.bf16 %v585_v7, %v517_v4 }
  0x4e   : > { %712 = vst [vmem:[%s1098_s22 + $0x1f0] sm:$0xff] %v648_v8 }
  0x4f   : > { %713 = vst [vmem:[%s1098_s22 + $0x1f8] sm:$0xff] %v649_v9 }
  0x50 PF: > { %s14_s16 = sadd.s32 1, %s920_s16   ;;  %s1390_s14 = smov %s916_s15 }
  0x51   : > { %p11_p7 = scmp.ge.s32.totalorder %s14_s16, 4   ;;  %s1391_s15 = smov %s1393_s0 }
  0x53   :  { %13 = sbr.rel (!%p11_p7) target bundleno = 2 (0x2), region = 61 }

</bundles_post_ra>
